<compile_context>
chip_gen: v7x
topology: tpu7x:2x2x1
jax: 0.10.0
libtpu: 0.0.40
codegen_flags: <defaults>
</compile_context>

<pallas_src>
import functools

import jax
import jax.numpy as jnp
from jax.experimental import pallas as pl
from jax.experimental.pallas import tpu as pltpu


def _round_up(v, m):
    return (v + m - 1) // m * m


def _num_tensorcores_per_chip():
    # v7x has 2 TensorCores per chip; v5e/v6e have 1.  Fallback to 1 on any
    # unexpected backend (e.g. interpret mode on CPU).
    try:
        kind = jax.devices()[0].device_kind.lower()
    except Exception:
        return 1
    return 2 if ("v7" in kind or "tpu7" in kind) else 1


# ---------------------------------------------------------------------------
# Pallas kernel: body GEMM + fused adv1|val1 GEMM + heads + dueling softmax
# ---------------------------------------------------------------------------
def _dueling_kernel(x_ref, w1_ref, b1_ref, wh_ref, bh_ref,
                    wa2_ref, ba2_ref, wv2_ref, bv2_ref, out_ref,
                    *, num_actions, atoms, atoms_pad, hidden):
    # SimpleBody: relu(fc1(x)) -- bf16 GEMM inputs, f32 accumulate, f32 VPU math
    h = jnp.dot(x_ref[...], w1_ref[...], preferred_element_type=jnp.float32)
    h = jnp.maximum(h + b1_ref[...], 0.0).astype(jnp.bfloat16)

    # fused adv1 | val1 : one (hidden, 2*hidden) GEMM, lane-aligned split at `hidden`
    hv = jnp.dot(h, wh_ref[...], preferred_element_type=jnp.float32)
    hv = jnp.maximum(hv + bh_ref[...], 0.0).astype(jnp.bfloat16)
    a1 = hv[:, :hidden]
    v1 = hv[:, hidden:]

    # heads.  wa2/ba2 are mean-folded in the wrapper, so `adv` already equals
    # adv - mean_a(adv); the dueling combine is just val + adv_block.
    adv = jnp.dot(a1, wa2_ref[...], preferred_element_type=jnp.float32) + ba2_ref[...]
    val = jnp.dot(v1, wv2_ref[...], preferred_element_type=jnp.float32) + bv2_ref[...]

    # lanes >= atoms are padding: exclude them from the softmax
    lane = jax.lax.broadcasted_iota(jnp.int32, val.shape, 1)
    valid = lane < atoms
    neg_inf = jnp.float32(-1e30)

    for a in range(num_actions):
        final = val + adv[:, a * atoms_pad:(a + 1) * atoms_pad]
        final = jnp.where(valid, final, neg_inf)
        m = jnp.max(final, axis=-1, keepdims=True)
        e = jnp.where(valid, jnp.exp(final - m), 0.0)
        s = jnp.sum(e, axis=-1, keepdims=True)
        # exact f32 divide (NOT approx reciprocal) so probabilities sum to 1.
        out_ref[:, a * atoms_pad:(a + 1) * atoms_pad] = (e / s).astype(out_ref.dtype)


# ---------------------------------------------------------------------------
# Wrapper-side parameter prep: bf16 cast, adv1|val1 fusion, dueling-mean fold,
# 128-lane atom padding.
# ---------------------------------------------------------------------------
def prepare_params(p, *, num_actions, atoms, atoms_pad, hidden):
    w1 = p["w_fc1"].astype(jnp.bfloat16)
    b1 = p["b_fc1"].astype(jnp.float32)

    wh = jnp.concatenate([p["w_adv1"], p["w_val1"]], axis=1).astype(jnp.bfloat16)
    bh = jnp.concatenate([p["b_adv1"], p["b_val1"]], axis=1).astype(jnp.float32)

    pad = atoms_pad - atoms

    # Fold the dueling mean over actions into the adv2 head:
    #   adv'(x) = adv(x) - mean_a adv(x) = x @ (W - mean_a W) + (b - mean_a b)
    wa2 = p["w_adv2"].reshape(hidden, num_actions, atoms).astype(jnp.float32)
    wa2 = wa2 - jnp.mean(wa2, axis=1, keepdims=True)
    wa2 = jnp.pad(wa2, ((0, 0), (0, 0), (0, pad)))
    wa2 = wa2.reshape(hidden, num_actions * atoms_pad).astype(jnp.bfloat16)

    ba2 = p["b_adv2"].reshape(1, num_actions, atoms).astype(jnp.float32)
    ba2 = ba2 - jnp.mean(ba2, axis=1, keepdims=True)
    ba2 = jnp.pad(ba2, ((0, 0), (0, 0), (0, pad)))
    ba2 = ba2.reshape(1, num_actions * atoms_pad)

    wv2 = jnp.pad(p["w_val2"], ((0, 0), (0, pad))).astype(jnp.bfloat16)
    bv2 = jnp.pad(p["b_val2"], ((0, 0), (0, pad))).astype(jnp.float32)
    return w1, b1, wh, bh, wa2, ba2, wv2, bv2


# ---------------------------------------------------------------------------
# Forward
# ---------------------------------------------------------------------------
def categorical_dueling_dqn_forward(x, params, *, num_actions, atoms, hidden=512):
    """x: (B, obs_dim) float32.  Returns (B, num_actions, atoms) probabilities."""
    B, obs_dim = x.shape
    assert hidden % 128 == 0
    atoms_pad = _round_up(atoms, 128)            # full lane group per action

    # Batch tiling: ~256 rows/step, but (a) at least one step per TensorCore
    # when there are >= 8 rows per core (v7x sharding via "parallel"), and
    # (b) TB derived from the step count so ragged batches pad by < 8*g rows.
    num_tc = _num_tensorcores_per_chip()
    g = max(pl.cdiv(B, 256), min(num_tc, max(B // 8, 1)))
    TB = _round_up(pl.cdiv(B, g), 8)
    B_pad = g * TB
    if B_pad != B:
        x = jnp.pad(x, ((0, B_pad - B), (0, 0)))
    x = x.astype(jnp.bfloat16)

    w1, b1, wh, bh, wa2, ba2, wv2, bv2 = prepare_params(
        params, num_actions=num_actions, atoms=atoms, atoms_pad=atoms_pad,
        hidden=hidden)

    kernel = functools.partial(
        _dueling_kernel, num_actions=num_actions, atoms=atoms,
        atoms_pad=atoms_pad, hidden=hidden)

    def resident(arr):
        # Full-array block with a constant index map: DMA'd once, stays in
        # VMEM across all grid steps.  Total resident weights ~1.7 MB bf16, so
        # VMEM (64 MiB v7x / 128 MiB v5e/v6e) is never the constraint here.
        return pl.BlockSpec(arr.shape, lambda i: (0, 0))

    out = pl.pallas_call(
        kernel,
        out_shape=jax.ShapeDtypeStruct((B_pad, num_actions * atoms_pad), jnp.float32),
        grid=(B_pad // TB,),
        in_specs=[
            pl.BlockSpec((TB, obs_dim), lambda i: (i, 0)),
            resident(w1), resident(b1),
            resident(wh), resident(bh),
            resident(wa2), resident(ba2),
            resident(wv2), resident(bv2),
        ],
        out_specs=pl.BlockSpec((TB, num_actions * atoms_pad), lambda i: (i, 0)),
        compiler_params=pltpu.CompilerParams(
            dimension_semantics=("parallel",)),
    )(x, w1, b1, wh, bh, wa2, ba2, wv2, bv2)

    out = out[:B].reshape(B, num_actions, atoms_pad)[:, :, :atoms]
    return out


# ---------------------------------------------------------------------------
# Deterministic parameter init (PyTorch-Linear-style uniform(+-1/sqrt(fan_in)))
# weights stored already transposed to (in, out); biases as (1, out)
# ---------------------------------------------------------------------------
def init_params(key, obs_dim, num_actions, atoms, hidden=512):
    def linear(key, fan_in, fan_out):
        kw, kb = jax.random.split(key)
        bound = 1.0 / jnp.sqrt(fan_in)
        w = jax.random.uniform(kw, (fan_in, fan_out), jnp.float32, -bound, bound)
        b = jax.random.uniform(kb, (1, fan_out), jnp.float32, -bound, bound)
        return w, b

    keys = jax.random.split(key, 5)
    w_fc1, b_fc1 = linear(keys[0], obs_dim, hidden)                 # SimpleBody.fc1
    w_adv1, b_adv1 = linear(keys[1], hidden, hidden)                # adv1
    w_adv2, b_adv2 = linear(keys[2], hidden, num_actions * atoms)   # adv2
    w_val1, b_val1 = linear(keys[3], hidden, hidden)                # val1
    w_val2, b_val2 = linear(keys[4], hidden, atoms)                 # val2
    return dict(
        w_fc1=w_fc1, b_fc1=b_fc1,
        w_adv1=w_adv1, b_adv1=b_adv1,
        w_adv2=w_adv2, b_adv2=b_adv2,
        w_val1=w_val1, b_val1=b_val1,
        w_val2=w_val2, b_val2=b_val2,
    )


# ---------------------------------------------------------------------------
# Pure-JAX reference (mirrors the PyTorch forward; weights/activations routed
# through bf16 like the kernel so tolerances stay tight).  The dueling mean is
# computed explicitly here (un-folded), matching the module semantics.
# ---------------------------------------------------------------------------
def reference_forward(x, p, *, num_actions, atoms):
    def wq(name):
        return p[name].astype(jnp.bfloat16).astype(jnp.float32)

    def aq(v):
        return v.astype(jnp.bfloat16).astype(jnp.float32)

    xb = aq(x)
    h = jax.nn.relu(xb @ wq("w_fc1") + p["b_fc1"])
    hb = aq(h)
    a1 = aq(jax.nn.relu(hb @ wq("w_adv1") + p["b_adv1"]))
    v1 = aq(jax.nn.relu(hb @ wq("w_val1") + p["b_val1"]))
    adv = (a1 @ wq("w_adv2") + p["b_adv2"]).reshape(-1, num_actions, atoms)
    val = (v1 @ wq("w_val2") + p["b_val2"]).reshape(-1, 1, atoms)
    final = val + adv - adv.mean(axis=1, keepdims=True)
    return jax.nn.softmax(final, axis=2)


if __name__ == "__main__":
    B = 2
    OBS_DIM = 16          # SimpleBody: input_shape = (OBS_DIM,)
    NUM_ACTIONS = 4
    ATOMS = 51
    HIDDEN = 512

    key = jax.random.PRNGKey(0)
    k_x, k_p = jax.random.split(key)
    x = jax.random.normal(k_x, (B, OBS_DIM), jnp.float32)
    params = init_params(k_p, OBS_DIM, NUM_ACTIONS, ATOMS, HIDDEN)

    out = categorical_dueling_dqn_forward(
        x, params, num_actions=NUM_ACTIONS, atoms=ATOMS, hidden=HIDDEN)
    out = jax.block_until_ready(out)

    ref = reference_forward(x, params, num_actions=NUM_ACTIONS, atoms=ATOMS)
    assert out.shape == (B, NUM_ACTIONS, ATOMS)
    assert jnp.allclose(out, ref, atol=5e-3, rtol=5e-3), "mismatch vs reference"
    # probabilities must normalize over atoms (exact divide in the kernel)
    assert jnp.allclose(out.sum(axis=-1), 1.0, atol=1e-3), "softmax not normalized"

    print("KERNEL_OK")
</pallas_src>

<mosaic_0001>
module attributes {stable_mosaic.version = 11 : i64} {
  func.func @_dueling_kernel(%arg0: i32, %arg1: memref<8x16xbf16, #tpu.memory_space<vmem>>, %arg2: memref<16x512xbf16, #tpu.memory_space<vmem>>, %arg3: memref<1x512xf32, #tpu.memory_space<vmem>>, %arg4: memref<512x1024xbf16, #tpu.memory_space<vmem>>, %arg5: memref<1x1024xf32, #tpu.memory_space<vmem>>, %arg6: memref<512x512xbf16, #tpu.memory_space<vmem>>, %arg7: memref<1x512xf32, #tpu.memory_space<vmem>>, %arg8: memref<512x128xbf16, #tpu.memory_space<vmem>>, %arg9: memref<1x128xf32, #tpu.memory_space<vmem>>, %arg10: memref<8x512xf32, #tpu.memory_space<vmem>>) attributes {dimension_semantics = [#tpu.dimension_semantics<parallel>], iteration_bounds = array<i64: 1>, scalar_prefetch = 0 : i64, scratch_operands = 0 : i64, tpu.core_type = #tpu.core_type<tc>, window_params = [{transform_indices = @transform_0, window_bounds = array<i64: 8, 16>}, {pipeline_mode = #tpu.pipeline_mode<synchronous>, transform_indices = @transform_1, window_bounds = array<i64: 16, 512>}, {pipeline_mode = #tpu.pipeline_mode<synchronous>, transform_indices = @transform_2, window_bounds = array<i64: 1, 512>}, {pipeline_mode = #tpu.pipeline_mode<synchronous>, transform_indices = @transform_3, window_bounds = array<i64: 512, 1024>}, {pipeline_mode = #tpu.pipeline_mode<synchronous>, transform_indices = @transform_4, window_bounds = array<i64: 1, 1024>}, {pipeline_mode = #tpu.pipeline_mode<synchronous>, transform_indices = @transform_5, window_bounds = array<i64: 512, 512>}, {pipeline_mode = #tpu.pipeline_mode<synchronous>, transform_indices = @transform_6, window_bounds = array<i64: 1, 512>}, {pipeline_mode = #tpu.pipeline_mode<synchronous>, transform_indices = @transform_7, window_bounds = array<i64: 512, 128>}, {pipeline_mode = #tpu.pipeline_mode<synchronous>, transform_indices = @transform_8, window_bounds = array<i64: 1, 128>}, {transform_indices = @transform_9, window_bounds = array<i64: 8, 512>}]} {
    %c0 = arith.constant 0 : index
    %c0_0 = arith.constant 0 : index
    %0 = vector.load %arg1[%c0, %c0_0] : memref<8x16xbf16, #tpu.memory_space<vmem>>, vector<8x16xbf16>
    %c0_1 = arith.constant 0 : index
    %c0_2 = arith.constant 0 : index
    %1 = vector.load %arg2[%c0_1, %c0_2] : memref<16x512xbf16, #tpu.memory_space<vmem>>, vector<16x512xbf16>
    %cst = arith.constant dense<0.000000e+00> : vector<8x512xf32>
    %2 = tpu.matmul %0, %1, %cst {dimension_numbers = #tpu.dot_dimension_numbers<[1], [0], [0], [1], [0, 0, 1, 1], [], []>} : vector<8x16xbf16>, vector<16x512xbf16>, vector<8x512xf32> -> vector<8x512xf32>
    %c0_3 = arith.constant 0 : index
    %c0_4 = arith.constant 0 : index
    %3 = vector.load %arg3[%c0_3, %c0_4] : memref<1x512xf32, #tpu.memory_space<vmem>>, vector<1x512xf32>
    %4 = vector.broadcast %3 : vector<1x512xf32> to vector<8x512xf32>
    %5 = arith.addf %2, %4 : vector<8x512xf32>
    %cst_5 = arith.constant 0.000000e+00 : f32
    %6 = vector.broadcast %cst_5 : f32 to vector<8x512xf32>
    %7 = arith.maximumf %5, %6 : vector<8x512xf32>
    %8 = arith.truncf %7 : vector<8x512xf32> to vector<8x512xbf16>
    %c0_6 = arith.constant 0 : index
    %c0_7 = arith.constant 0 : index
    %9 = vector.load %arg4[%c0_6, %c0_7] : memref<512x1024xbf16, #tpu.memory_space<vmem>>, vector<512x1024xbf16>
    %cst_8 = arith.constant dense<0.000000e+00> : vector<8x1024xf32>
    %10 = tpu.matmul %8, %9, %cst_8 {dimension_numbers = #tpu.dot_dimension_numbers<[1], [0], [0], [1], [0, 0, 1, 1], [], []>} : vector<8x512xbf16>, vector<512x1024xbf16>, vector<8x1024xf32> -> vector<8x1024xf32>
    %c0_9 = arith.constant 0 : index
    %c0_10 = arith.constant 0 : index
    %11 = vector.load %arg5[%c0_9, %c0_10] : memref<1x1024xf32, #tpu.memory_space<vmem>>, vector<1x1024xf32>
    %12 = vector.broadcast %11 : vector<1x1024xf32> to vector<8x1024xf32>
    %13 = arith.addf %10, %12 : vector<8x1024xf32>
    %cst_11 = arith.constant 0.000000e+00 : f32
    %14 = vector.broadcast %cst_11 : f32 to vector<8x1024xf32>
    %15 = arith.maximumf %13, %14 : vector<8x1024xf32>
    %16 = arith.truncf %15 : vector<8x1024xf32> to vector<8x1024xbf16>
    %17 = vector.extract_strided_slice %16 {offsets = [0, 0], sizes = [8, 512], strides = [1, 1]} : vector<8x1024xbf16> to vector<8x512xbf16>
    %18 = vector.extract_strided_slice %16 {offsets = [0, 512], sizes = [8, 512], strides = [1, 1]} : vector<8x1024xbf16> to vector<8x512xbf16>
    %c0_12 = arith.constant 0 : index
    %c0_13 = arith.constant 0 : index
    %19 = vector.load %arg6[%c0_12, %c0_13] : memref<512x512xbf16, #tpu.memory_space<vmem>>, vector<512x512xbf16>
    %cst_14 = arith.constant dense<0.000000e+00> : vector<8x512xf32>
    %20 = tpu.matmul %17, %19, %cst_14 {dimension_numbers = #tpu.dot_dimension_numbers<[1], [0], [0], [1], [0, 0, 1, 1], [], []>} : vector<8x512xbf16>, vector<512x512xbf16>, vector<8x512xf32> -> vector<8x512xf32>
    %c0_15 = arith.constant 0 : index
    %c0_16 = arith.constant 0 : index
    %21 = vector.load %arg7[%c0_15, %c0_16] : memref<1x512xf32, #tpu.memory_space<vmem>>, vector<1x512xf32>
    %22 = vector.broadcast %21 : vector<1x512xf32> to vector<8x512xf32>
    %23 = arith.addf %20, %22 : vector<8x512xf32>
    %c0_17 = arith.constant 0 : index
    %c0_18 = arith.constant 0 : index
    %24 = vector.load %arg8[%c0_17, %c0_18] : memref<512x128xbf16, #tpu.memory_space<vmem>>, vector<512x128xbf16>
    %cst_19 = arith.constant dense<0.000000e+00> : vector<8x128xf32>
    %25 = tpu.matmul %18, %24, %cst_19 {dimension_numbers = #tpu.dot_dimension_numbers<[1], [0], [0], [1], [0, 0, 1, 1], [], []>} : vector<8x512xbf16>, vector<512x128xbf16>, vector<8x128xf32> -> vector<8x128xf32>
    %c0_20 = arith.constant 0 : index
    %c0_21 = arith.constant 0 : index
    %26 = vector.load %arg9[%c0_20, %c0_21] : memref<1x128xf32, #tpu.memory_space<vmem>>, vector<1x128xf32>
    %27 = vector.broadcast %26 : vector<1x128xf32> to vector<8x128xf32>
    %28 = arith.addf %25, %27 : vector<8x128xf32>
    %29 = tpu.iota {dimensions = array<i32: 1>} : vector<8x128xi32>
    %c51_i32 = arith.constant 51 : i32
    %30 = vector.broadcast %c51_i32 : i32 to vector<8x128xi32>
    %31 = arith.cmpi slt, %29, %30 : vector<8x128xi32>
    %32 = vector.extract_strided_slice %23 {offsets = [0, 0], sizes = [8, 128], strides = [1, 1]} : vector<8x512xf32> to vector<8x128xf32>
    %33 = arith.addf %28, %32 : vector<8x128xf32>
    %cst_22 = arith.constant -1.000000e+30 : f32
    %34 = vector.broadcast %cst_22 : f32 to vector<8x128xf32>
    %35 = arith.select %31, %33, %34 : vector<8x128xi1>, vector<8x128xf32>
    %cst_23 = arith.constant dense<0xFF800000> : vector<8xf32>
    %36 = vector.multi_reduction <maximumf>, %35, %cst_23 [1] : vector<8x128xf32> to vector<8xf32>
    %37 = vector.shape_cast %36 : vector<8xf32> to vector<8x1xf32>
    %38 = vector.broadcast %37 : vector<8x1xf32> to vector<8x128xf32>
    %39 = arith.subf %35, %38 : vector<8x128xf32>
    %40 = math.exp %39 : vector<8x128xf32>
    %cst_24 = arith.constant 0.000000e+00 : f32
    %41 = vector.broadcast %cst_24 : f32 to vector<8x128xf32>
    %42 = arith.select %31, %40, %41 : vector<8x128xi1>, vector<8x128xf32>
    %cst_25 = arith.constant dense<0.000000e+00> : vector<8xf32>
    %43 = vector.multi_reduction <add>, %42, %cst_25 [1] : vector<8x128xf32> to vector<8xf32>
    %44 = vector.shape_cast %43 : vector<8xf32> to vector<8x1xf32>
    %45 = vector.broadcast %44 : vector<8x1xf32> to vector<8x128xf32>
    %46 = arith.divf %42, %45 : vector<8x128xf32>
    %c0_26 = arith.constant 0 : index
    %c0_27 = arith.constant 0 : index
    %47 = vector.load %arg10[%c0_26, %c0_27] : memref<8x512xf32, #tpu.memory_space<vmem>>, vector<8x128xf32>
    tpu.vector_store %arg10[%c0_26, %c0_27], %46 {strides = array<i32>} : memref<8x512xf32, #tpu.memory_space<vmem>>, vector<8x128xf32>,
    %48 = vector.extract_strided_slice %23 {offsets = [0, 128], sizes = [8, 128], strides = [1, 1]} : vector<8x512xf32> to vector<8x128xf32>
    %49 = arith.addf %28, %48 : vector<8x128xf32>
    %cst_28 = arith.constant -1.000000e+30 : f32
    %50 = vector.broadcast %cst_28 : f32 to vector<8x128xf32>
    %51 = arith.select %31, %49, %50 : vector<8x128xi1>, vector<8x128xf32>
    %cst_29 = arith.constant dense<0xFF800000> : vector<8xf32>
    %52 = vector.multi_reduction <maximumf>, %51, %cst_29 [1] : vector<8x128xf32> to vector<8xf32>
    %53 = vector.shape_cast %52 : vector<8xf32> to vector<8x1xf32>
    %54 = vector.broadcast %53 : vector<8x1xf32> to vector<8x128xf32>
    %55 = arith.subf %51, %54 : vector<8x128xf32>
    %56 = math.exp %55 : vector<8x128xf32>
    %cst_30 = arith.constant 0.000000e+00 : f32
    %57 = vector.broadcast %cst_30 : f32 to vector<8x128xf32>
    %58 = arith.select %31, %56, %57 : vector<8x128xi1>, vector<8x128xf32>
    %cst_31 = arith.constant dense<0.000000e+00> : vector<8xf32>
    %59 = vector.multi_reduction <add>, %58, %cst_31 [1] : vector<8x128xf32> to vector<8xf32>
    %60 = vector.shape_cast %59 : vector<8xf32> to vector<8x1xf32>
    %61 = vector.broadcast %60 : vector<8x1xf32> to vector<8x128xf32>
    %62 = arith.divf %58, %61 : vector<8x128xf32>
    %c0_32 = arith.constant 0 : index
    %c128 = arith.constant 128 : index
    %63 = vector.load %arg10[%c0_32, %c128] : memref<8x512xf32, #tpu.memory_space<vmem>>, vector<8x128xf32>
    tpu.vector_store %arg10[%c0_32, %c128], %62 {strides = array<i32>} : memref<8x512xf32, #tpu.memory_space<vmem>>, vector<8x128xf32>,
    %64 = vector.extract_strided_slice %23 {offsets = [0, 256], sizes = [8, 128], strides = [1, 1]} : vector<8x512xf32> to vector<8x128xf32>
    %65 = arith.addf %28, %64 : vector<8x128xf32>
    %cst_33 = arith.constant -1.000000e+30 : f32
    %66 = vector.broadcast %cst_33 : f32 to vector<8x128xf32>
    %67 = arith.select %31, %65, %66 : vector<8x128xi1>, vector<8x128xf32>
    %cst_34 = arith.constant dense<0xFF800000> : vector<8xf32>
    %68 = vector.multi_reduction <maximumf>, %67, %cst_34 [1] : vector<8x128xf32> to vector<8xf32>
    %69 = vector.shape_cast %68 : vector<8xf32> to vector<8x1xf32>
    %70 = vector.broadcast %69 : vector<8x1xf32> to vector<8x128xf32>
    %71 = arith.subf %67, %70 : vector<8x128xf32>
    %72 = math.exp %71 : vector<8x128xf32>
    %cst_35 = arith.constant 0.000000e+00 : f32
    %73 = vector.broadcast %cst_35 : f32 to vector<8x128xf32>
    %74 = arith.select %31, %72, %73 : vector<8x128xi1>, vector<8x128xf32>
    %cst_36 = arith.constant dense<0.000000e+00> : vector<8xf32>
    %75 = vector.multi_reduction <add>, %74, %cst_36 [1] : vector<8x128xf32> to vector<8xf32>
    %76 = vector.shape_cast %75 : vector<8xf32> to vector<8x1xf32>
    %77 = vector.broadcast %76 : vector<8x1xf32> to vector<8x128xf32>
    %78 = arith.divf %74, %77 : vector<8x128xf32>
    %c0_37 = arith.constant 0 : index
    %c256 = arith.constant 256 : index
    %79 = vector.load %arg10[%c0_37, %c256] : memref<8x512xf32, #tpu.memory_space<vmem>>, vector<8x128xf32>
    tpu.vector_store %arg10[%c0_37, %c256], %78 {strides = array<i32>} : memref<8x512xf32, #tpu.memory_space<vmem>>, vector<8x128xf32>,
    %80 = vector.extract_strided_slice %23 {offsets = [0, 384], sizes = [8, 128], strides = [1, 1]} : vector<8x512xf32> to vector<8x128xf32>
    %81 = arith.addf %28, %80 : vector<8x128xf32>
    %cst_38 = arith.constant -1.000000e+30 : f32
    %82 = vector.broadcast %cst_38 : f32 to vector<8x128xf32>
    %83 = arith.select %31, %81, %82 : vector<8x128xi1>, vector<8x128xf32>
    %cst_39 = arith.constant dense<0xFF800000> : vector<8xf32>
    %84 = vector.multi_reduction <maximumf>, %83, %cst_39 [1] : vector<8x128xf32> to vector<8xf32>
    %85 = vector.shape_cast %84 : vector<8xf32> to vector<8x1xf32>
    %86 = vector.broadcast %85 : vector<8x1xf32> to vector<8x128xf32>
    %87 = arith.subf %83, %86 : vector<8x128xf32>
    %88 = math.exp %87 : vector<8x128xf32>
    %cst_40 = arith.constant 0.000000e+00 : f32
    %89 = vector.broadcast %cst_40 : f32 to vector<8x128xf32>
    %90 = arith.select %31, %88, %89 : vector<8x128xi1>, vector<8x128xf32>
    %cst_41 = arith.constant dense<0.000000e+00> : vector<8xf32>
    %91 = vector.multi_reduction <add>, %90, %cst_41 [1] : vector<8x128xf32> to vector<8xf32>
    %92 = vector.shape_cast %91 : vector<8xf32> to vector<8x1xf32>
    %93 = vector.broadcast %92 : vector<8x1xf32> to vector<8x128xf32>
    %94 = arith.divf %90, %93 : vector<8x128xf32>
    %c0_42 = arith.constant 0 : index
    %c384 = arith.constant 384 : index
    %95 = vector.load %arg10[%c0_42, %c384] : memref<8x512xf32, #tpu.memory_space<vmem>>, vector<8x128xf32>
    tpu.vector_store %arg10[%c0_42, %c384], %94 {strides = array<i32>} : memref<8x512xf32, #tpu.memory_space<vmem>>, vector<8x128xf32>,
    return
  }
  func.func @transform_0(%arg0: i32) -> (i32, i32) {
    %c0_i32 = arith.constant 0 : i32
    %c0_i32_0 = arith.constant 0 : i32
    return %arg0, %c0_i32 : i32, i32
  }
  func.func @transform_1(%arg0: i32) -> (i32, i32) {
    %c0_i32 = arith.constant 0 : i32
    %c0_i32_0 = arith.constant 0 : i32
    %c0_i32_1 = arith.constant 0 : i32
    return %c0_i32, %c0_i32_0 : i32, i32
  }
  func.func @transform_2(%arg0: i32) -> (i32, i32) {
    %c0_i32 = arith.constant 0 : i32
    %c0_i32_0 = arith.constant 0 : i32
    %c0_i32_1 = arith.constant 0 : i32
    return %c0_i32, %c0_i32_0 : i32, i32
  }
  func.func @transform_3(%arg0: i32) -> (i32, i32) {
    %c0_i32 = arith.constant 0 : i32
    %c0_i32_0 = arith.constant 0 : i32
    %c0_i32_1 = arith.constant 0 : i32
    return %c0_i32, %c0_i32_0 : i32, i32
  }
  func.func @transform_4(%arg0: i32) -> (i32, i32) {
    %c0_i32 = arith.constant 0 : i32
    %c0_i32_0 = arith.constant 0 : i32
    %c0_i32_1 = arith.constant 0 : i32
    return %c0_i32, %c0_i32_0 : i32, i32
  }
  func.func @transform_5(%arg0: i32) -> (i32, i32) {
    %c0_i32 = arith.constant 0 : i32
    %c0_i32_0 = arith.constant 0 : i32
    %c0_i32_1 = arith.constant 0 : i32
    return %c0_i32, %c0_i32_0 : i32, i32
  }
  func.func @transform_6(%arg0: i32) -> (i32, i32) {
    %c0_i32 = arith.constant 0 : i32
    %c0_i32_0 = arith.constant 0 : i32
    %c0_i32_1 = arith.constant 0 : i32
    return %c0_i32, %c0_i32_0 : i32, i32
  }
  func.func @transform_7(%arg0: i32) -> (i32, i32) {
    %c0_i32 = arith.constant 0 : i32
    %c0_i32_0 = arith.constant 0 : i32
    %c0_i32_1 = arith.constant 0 : i32
    return %c0_i32, %c0_i32_0 : i32, i32
  }
  func.func @transform_8(%arg0: i32) -> (i32, i32) {
    %c0_i32 = arith.constant 0 : i32
    %c0_i32_0 = arith.constant 0 : i32
    %c0_i32_1 = arith.constant 0 : i32
    return %c0_i32, %c0_i32_0 : i32, i32
  }
  func.func @transform_9(%arg0: i32) -> (i32, i32) {
    %c0_i32 = arith.constant 0 : i32
    %c0_i32_0 = arith.constant 0 : i32
    return %arg0, %c0_i32 : i32, i32
  }
}

</mosaic_0001>

<bundles_post_ra>
// kernel: tpu_custom_call.1
= control target key start
LH: loop header
LB: loop body
LE: loop exit
PB: predicated region body
PF: predicated region fallthrough
CT: control target
= control target key end

     0   :  { %14 = vsyncpa [#allocation3], 0  ;;  %s4662_s0 = inlined_call_operand.hbm [shape: bf16[8,16], index: 0, kind: input, shape index: {}]   ;;  %s4663_s1 = inlined_call_operand.hbm [shape: bf16[16,512], index: 1, kind: input, shape index: {}]   ;;  %s4664_s2 = inlined_call_operand.vmem [shape: f32[1,512], index: 2, kind: input, shape index: {}]   ;;  %s4665_s3 = inlined_call_operand.hbm [shape: bf16[512,1024], index: 3, kind: input, shape index: {}]   ;;  %s4666_s4 = inlined_call_operand.vmem [shape: f32[1,1024], index: 4, kind: input, shape index: {}]   ;;  %s4667_s5 = inlined_call_operand.hbm [shape: bf16[512,512], index: 5, kind: input, shape index: {}]   ;;  %s4668_s6 = inlined_call_operand.vmem [shape: f32[1,512], index: 6, kind: input, shape index: {}]   ;;  %s4669_s7 = inlined_call_operand.hbm [shape: bf16[512,128], index: 7, kind: input, shape index: {}]   ;;  %s4670_s8 = inlined_call_operand.vmem [shape: f32[1,128], index: 8, kind: input, shape index: {}]   ;;  %s4671_s9 = inlined_call_operand.hbm [shape: f32[8,512], index: 9, kind: output, shape index: {}]  }
   0x1   :  { %15 = vsyncpa [#allocation6], 0 }
   0x2   :  { %16 = vsyncpa [#allocation9], 0 }
   0x3   :  { %17 = vsyncpa [#allocation4], 0  ;;  %s4422_s30 = smov [#allocation5]   ;;  %s4282_s13 = scalar_lea.hbm %s4663_s1, 512 }
   0x4   :  { %s33_s10 = sshll.u32 %s4422_s30, 4  ;;  %p4283_p0 = scmp.ne.s32.totalorder %s4663_s1, %s4282_s13  ;;  %s34_s10 = int_to_ptr.vmem [resolvable:$true] %s33_s10 }
   0x5   :  { %p4286_p1 = scmp.lt.u32.totalorder %s4282_s13, %s4663_s1 }
   0x7   :  { %p4288_p2 = pnand %p4286_p1, %p4283_p0 }
   0x9   :  { %4291 = shalt.err (!%p4288_p2)
}
   0xa   :  { %s4292_s18 = scalar_lea.vmem %s34_s10, 512  ;;  %p4297_p4 = scmp.lt.s32.totalorder %s34_s10, %s34_s10 }
   0xb   :  { %p4293_p3 = scmp.ne.s32.totalorder %s34_s10, %s4292_s18  ;;  %p4298_p5 = scmp.lt.s32.totalorder %s4292_s18, %s4292_s18 }
   0xd   :  { %p4299_p6 = por %p4298_p5, %p4297_p4 }
   0xf   :  { %p4300_p7 = pnand %p4299_p6, %p4293_p3 }
  0x11   :  { %4303 = shalt.err (!%p4300_p7)
}
  0x12   :  { %s4423_s19 = smov 256   ;;  %s4424_s20 = smov 16  }
  0x13   :  { %39 = dma.hbm_to_vmem [thread:$0]  %s4663_s1, 512, %s34_s10, [#allocation6], %s4423_s19, %s4423_s19, %s4424_s20  }
  0x14   :  { %s4425_s23 = smov [#allocation8]   ;;  %s4426_s25 = smov [#allocation2]  }
  0x15   :  { %s61_s24 = sshll.u32 %s4425_s23, 4  ;;  %s24_s26 = sshll.u32 %s4426_s25, 4  ;;  %s62_s24 = int_to_ptr.vmem [resolvable:$true] %s61_s24  ;;  %s25_s26 = int_to_ptr.vmem [resolvable:$true] %s24_s26 }
  0x16   :  { %s4304_s29 = scalar_lea.hbm %s4667_s5, 16384 }
  0x17   :  { %p4305_p8 = scmp.ne.s32.totalorder %s4667_s5, %s4304_s29  ;;  %p4308_p9 = scmp.lt.u32.totalorder %s4304_s29, %s4667_s5 }
  0x19   :  { %p4310_p10 = pnand %p4308_p9, %p4305_p8 }
  0x1b   :  { %4313 = shalt.err (!%p4310_p10)
}
  0x1c   :  { %s4314_s1 = scalar_lea.vmem %s62_s24, 16384  ;;  %p4319_p12 = scmp.lt.s32.totalorder %s62_s24, %s62_s24 }
  0x1d   :  { %p4315_p11 = scmp.ne.s32.totalorder %s62_s24, %s4314_s1  ;;  %p4320_p13 = scmp.lt.s32.totalorder %s4314_s1, %s4314_s1 }
  0x1f   :  { %p4321_p0 = por %p4320_p13, %p4319_p12 }
  0x21   :  { %p4322_p1 = pnand %p4321_p0, %p4315_p11 }
  0x23   :  { %4325 = shalt.err (!%p4322_p1)
}
  0x24   :  { %67 = dma.hbm_to_vmem [thread:$0]  %s4667_s5, 16384, %s62_s24, [#allocation9], %s4423_s19, %s4423_s19, %s4424_s20  }
  0x25   :  { %s4326_s17 = scalar_lea.hbm %s4662_s0, 64 }
  0x26   :  { %p4327_p2 = scmp.ne.s32.totalorder %s4662_s0, %s4326_s17  ;;  %p4330_p3 = scmp.lt.u32.totalorder %s4326_s17, %s4662_s0 }
  0x28   :  { %p4332_p4 = pnand %p4330_p3, %p4327_p2 }
  0x2a   :  { %4335 = shalt.err (!%p4332_p4)
}
  0x2b   :  { %s4336_s25 = scalar_lea.vmem %s25_s26, 64  ;;  %p4341_p6 = scmp.lt.s32.totalorder %s25_s26, %s25_s26 }
  0x2c   :  { %p4337_p5 = scmp.ne.s32.totalorder %s25_s26, %s4336_s25  ;;  %p4342_p7 = scmp.lt.s32.totalorder %s4336_s25, %s4336_s25 }
  0x2e   :  { %p4343_p8 = por %p4342_p7, %p4341_p6 }
  0x30   :  { %p4344_p9 = pnand %p4343_p8, %p4337_p5 }
  0x32   :  { %4347 = shalt.err (!%p4344_p9)
}
  0x33   :  { %27 = dma.hbm_to_vmem [thread:$0]  %s4662_s0, 64, %s25_s26, [#allocation3]  }
  0x34   :  { %s4427_s20 = smov [#allocation7]   ;;  %s4348_s29 = scalar_lea.hbm %s4665_s3, 32768 }
  0x35   :  { %s47_s24 = sshll.u32 %s4427_s20, 4  ;;  %p4349_p10 = scmp.ne.s32.totalorder %s4665_s3, %s4348_s29  ;;  %s48_s24 = int_to_ptr.vmem [resolvable:$true] %s47_s24 }
  0x36   :  { %p4352_p11 = scmp.lt.u32.totalorder %s4348_s29, %s4665_s3 }
  0x38   :  { %p4354_p12 = pnand %p4352_p11, %p4349_p10 }
  0x3a   :  { %4357 = shalt.err (!%p4354_p12)
}
  0x3b   :  { %s4358_s1 = scalar_lea.vmem %s48_s24, 32768  ;;  %p4363_p0 = scmp.lt.s32.totalorder %s48_s24, %s48_s24 }
  0x3c   :  { %p4359_p13 = scmp.ne.s32.totalorder %s48_s24, %s4358_s1  ;;  %p4364_p1 = scmp.lt.s32.totalorder %s4358_s1, %s4358_s1 }
  0x3e   :  { %p4365_p2 = por %p4364_p1, %p4363_p0 }
  0x40   :  { %p4366_p3 = pnand %p4365_p2, %p4359_p13 }
  0x42   :  { %4369 = shalt.err (!%p4366_p3)
}
  0x43   :  { %s4428_s0 = smov 512   ;;  %s4429_s26 = smov 32  }
  0x44   :  { %53 = dma.hbm_to_vmem [thread:$0]  %s4665_s3, 32768, %s48_s24, [#allocation6], %s4428_s0, %s4428_s0, %s4429_s26  }
  0x45   :  { %s4430_s15 = smov [#allocation10]   ;;  %s4370_s21 = scalar_lea.hbm %s4669_s7, 4096 }
  0x46   :  { %s75_s16 = sshll.u32 %s4430_s15, 4  ;;  %p4371_p4 = scmp.ne.s32.totalorder %s4669_s7, %s4370_s21  ;;  %s76_s16 = int_to_ptr.vmem [resolvable:$true] %s75_s16 }
  0x47   :  { %p4374_p5 = scmp.lt.u32.totalorder %s4370_s21, %s4669_s7 }
  0x49   :  { %p4376_p6 = pnand %p4374_p5, %p4371_p4 }
  0x4b   :  { %4379 = shalt.err (!%p4376_p6)
}
  0x4c   :  { %s4380_s19 = scalar_lea.vmem %s76_s16, 4096  ;;  %p4385_p8 = scmp.lt.s32.totalorder %s76_s16, %s76_s16 }
  0x4d   :  { %p4381_p7 = scmp.ne.s32.totalorder %s76_s16, %s4380_s19  ;;  %p4386_p9 = scmp.lt.s32.totalorder %s4380_s19, %s4380_s19 }
  0x4f   :  { %p4387_p10 = por %p4386_p9, %p4385_p8 }
  0x51   :  { %p4388_p11 = pnand %p4387_p10, %p4381_p7 }
  0x53   :  { %4391 = shalt.err (!%p4388_p11)
}
  0x54   :  { %s4431_s3 = smov 64   ;;  %s4432_s20 = smov 4  }
  0x55   :  { %81 = dma.hbm_to_vmem [thread:$0]  %s4669_s7, 4096, %s76_s16, [#allocation9], %s4431_s3, %s4431_s3, %s4432_s20  }
  0x56   :  { %4414 = dma.done.wait [#allocation3], 64  }
  0x57   :  { %4415 = vsyncadd [#allocation3], 4294967232 }
  0x58   :  { %4416 = dma.done.wait [#allocation6], 33280  }
  0x59   :  { %4417 = vsyncadd [#allocation6], 4294934016 }
  0x5a   :  { %4418 = dma.done.wait [#allocation9], 20480  }
  0x5b   :  { %4419 = vsyncadd [#allocation9], 4294946816  ;;  %v4433_v0 = vmov 0   ;;  %v4036_v1 = vld [vmem:[#allocation5 + $0x4] ss:$16 sps:$4 sm:$0xff]   ;;  %vm147_vm0 = vcmask 130048  }
  0x5c   :  { %183 = vmatprep.mubr.bf16.mxu0 %v4433_v0  ;;  %224 = vmatprep.mubr.bf16.mxu1 %v4433_v0  ;;  %v4038_v2 = vld [vmem:[#allocation5] ss:$16 sps:$4 sm:$0xff]   ;;  %v100_v3 = vld [vmem:[#allocation2] sm:$0xf]  ;;  %v4041_v5 = vld [vmem:[#allocation5 + $0x8] ss:$16 sps:$4 sm:$0xff]  }
  0x5d   :  { %151 = vmatprep.subr.bf16.mxu0 %v4036_v1  ;;  %v4039_v4 = vld [vmem:[#allocation5 + $0xc] ss:$16 sps:$4 sm:$0xff]   ;;  %v241_v6 = vld [vmem:[#allocation7] sm:$0xff] }
  0x5e   :  { %152 = vmatpush1.bf16.msra.mxu0 %v4038_v2  ;;  %v245_v7 = vld [vmem:[#allocation7 + $0x20] sm:$0xff]  ;;  %v242_v8 = vld [vmem:[#allocation7 + $0x8] sm:$0xff]  ;;  %192 = vmatprep.subr.bf16.mxu1 %v4039_v4 }
  0x5f   :  { %v3538_v9 = vcombine.low %v241_v6, %v245_v7  ;;  %v3539_v10 = vcombine.high %v241_v6, %v245_v7  ;;  %v246_v11 = vld [vmem:[#allocation7 + $0x28] sm:$0xff]  ;;  %v249_v12 = vld [vmem:[#allocation7 + $0x40] sm:$0xff]  ;;  %193 = vmatpush1.bf16.msra.mxu1 %v4041_v5 }
  0x60   :  { %v253_v13 = vld [vmem:[#allocation7 + $0x60] sm:$0xff]  ;;  %v3540_v14 = vcombine.low %v242_v8, %v246_v11  ;;  %v3541_v15 = vcombine.high %v242_v8, %v246_v11  ;;  %v250_v17 = vld [vmem:[#allocation7 + $0x48] sm:$0xff] }
  0x61   :  { %v3547_v16 = vcombine.high %v249_v12, %v253_v13  ;;  %v254_v18 = vld [vmem:[#allocation7 + $0x68] sm:$0xff]  ;;  %v257_v19 = vld [vmem:[#allocation7 + $0x80] sm:$0xff]  ;;  %3536 = vmatmul.mubr.msk.bf16.vlgmr.msra.gmra.mrb[0].mxu0 %vm147_vm0, %v100_v3  ;;  %1819 = vmatprep.subr.bf16.mxu0 %v3539_v10  ;;  %v3546_v22 = vcombine.low %v249_v12, %v253_v13 }
  0x62   :  { %v3549_v20 = vcombine.high %v250_v17, %v254_v18  ;;  %v261_v21 = vld [vmem:[#allocation7 + $0xa0] sm:$0xff]  ;;  %1901 = vmatprep.subr.bf16.mxu1 %v3541_v15  ;;  %1820 = vmatpush1.bf16.msra.mxu0 %v3538_v9  ;;  %v258_v23 = vld [vmem:[#allocation7 + $0x88] sm:$0xff]  ;;  %v3548_v26 = vcombine.low %v250_v17, %v254_v18 }
  0x63   :  { %v262_v24 = vld [vmem:[#allocation7 + $0xa8] sm:$0xff]  ;;  %3537 = vmatmul.mubr.msk.bf16.vlgmr.msra.gmra.mrb[0].mxu1 %vm147_vm0, %v100_v3  ;;  %1821 = vmatprep.subr.bf16.mxu0 %v3547_v16  ;;  %v3555_v25 = vcombine.high %v257_v19, %v261_v21  ;;  %v265_v27 = vld [vmem:[#allocation7 + $0xc0] sm:$0xff]  ;;  %v3554_v30 = vcombine.low %v257_v19, %v261_v21 }
  0x64   :  { %1902 = vmatpush1.bf16.msra.mxu1 %v3540_v14  ;;  %v269_v28 = vld [vmem:[#allocation7 + $0xe0] sm:$0xff]  ;;  %v3557_v29 = vcombine.high %v258_v23, %v262_v24  ;;  %v266_v31 = vld [vmem:[#allocation7 + $0xc8] sm:$0xff]  ;;  %v3556_v34 = vcombine.low %v258_v23, %v262_v24 }
  0x65   :  { %1903 = vmatprep.subr.bf16.mxu1 %v3549_v20  ;;  %v270_v32 = vld [vmem:[#allocation7 + $0xe8] sm:$0xff]  ;;  %v3563_v33 = vcombine.high %v265_v27, %v269_v28  ;;  %v273_v35 = vld [vmem:[#allocation7 + $0x100] sm:$0xff]  ;;  %v3562_v38 = vcombine.low %v265_v27, %v269_v28 }
  0x66   :  { %1822 = vmatpush1.bf16.msra.mxu0 %v3546_v22  ;;  %v277_v36 = vld [vmem:[#allocation7 + $0x120] sm:$0xff]  ;;  %v3565_v37 = vcombine.high %v266_v31, %v270_v32  ;;  %v274_v39 = vld [vmem:[#allocation7 + $0x108] sm:$0xff]  ;;  %v3564_v42 = vcombine.low %v266_v31, %v270_v32 }
  0x67   :  { %1823 = vmatprep.subr.bf16.mxu0 %v3555_v25  ;;  %v278_v40 = vld [vmem:[#allocation7 + $0x128] sm:$0xff]  ;;  %v3571_v41 = vcombine.high %v273_v35, %v277_v36  ;;  %v281_v43 = vld [vmem:[#allocation7 + $0x140] sm:$0xff]  ;;  %v3570_v46 = vcombine.low %v273_v35, %v277_v36 }
  0x68   :  { %1904 = vmatpush1.bf16.msra.mxu1 %v3548_v26  ;;  %v285_v44 = vld [vmem:[#allocation7 + $0x160] sm:$0xff]  ;;  %v3573_v45 = vcombine.high %v274_v39, %v278_v40  ;;  %v282_v47 = vld [vmem:[#allocation7 + $0x148] sm:$0xff]  ;;  %v3572_v51 = vcombine.low %v274_v39, %v278_v40 }
  0x69   :  { %1905 = vmatprep.subr.bf16.mxu1 %v3557_v29  ;;  %v286_v48 = vld [vmem:[#allocation7 + $0x168] sm:$0xff]  ;;  %v3579_v49 = vcombine.high %v281_v43, %v285_v44  ;;  %v289_v50 = vld [vmem:[#allocation7 + $0x180] sm:$0xff]  ;;  %v3578_v56 = vcombine.low %v281_v43, %v285_v44 }
  0x6a   :  { %1824 = vmatpush1.bf16.msra.mxu0 %v3554_v30  ;;  %v293_v52 = vld [vmem:[#allocation7 + $0x1a0] sm:$0xff]  ;;  %v290_v53 = vld [vmem:[#allocation7 + $0x188] sm:$0xff]  ;;  %v3581_v55 = vcombine.high %v282_v47, %v286_v48  ;;  %v3580_v60 = vcombine.low %v282_v47, %v286_v48 }
  0x6b   :  { %1825 = vmatprep.subr.bf16.mxu0 %v3563_v33  ;;  %v294_v54 = vld [vmem:[#allocation7 + $0x1a8] sm:$0xff]  ;;  %v297_v57 = vld [vmem:[#allocation7 + $0x1c0] sm:$0xff]  ;;  %v3587_v59 = vcombine.high %v289_v50, %v293_v52  ;;  %v3586_v0 = vcombine.low %v289_v50, %v293_v52 }
  0x6c   :  { %1906 = vmatpush1.bf16.msra.mxu1 %v3556_v34  ;;  %v301_v58 = vld [vmem:[#allocation7 + $0x1e0] sm:$0xff]  ;;  %v298_v61 = vld [vmem:[#allocation7 + $0x1c8] sm:$0xff]  ;;  %v3589_v63 = vcombine.high %v290_v53, %v294_v54  ;;  %v3588_v4 = vcombine.low %v290_v53, %v294_v54 }
  0x6d   :  { %1907 = vmatprep.subr.bf16.mxu1 %v3565_v37  ;;  %v302_v62 = vld [vmem:[#allocation7 + $0x1e8] sm:$0xff]  ;;  %v305_v1 = vld [vmem:[#allocation7 + $0x200] sm:$0xff]  ;;  %v3595_v3 = vcombine.high %v297_v57, %v301_v58  ;;  %v3594_v8 = vcombine.low %v297_v57, %v301_v58 }
  0x6e   :  { %1826 = vmatpush1.bf16.msra.mxu0 %v3562_v38  ;;  %v309_v2 = vld [vmem:[#allocation7 + $0x220] sm:$0xff]  ;;  %v306_v5 = vld [vmem:[#allocation7 + $0x208] sm:$0xff]  ;;  %v3597_v7 = vcombine.high %v298_v61, %v302_v62  ;;  %v3596_v12 = vcombine.low %v298_v61, %v302_v62 }
  0x6f   :  { %1827 = vmatprep.subr.bf16.mxu0 %v3571_v41  ;;  %v310_v6 = vld [vmem:[#allocation7 + $0x228] sm:$0xff]  ;;  %v313_v9 = vld [vmem:[#allocation7 + $0x240] sm:$0xff]  ;;  %v3603_v11 = vcombine.high %v305_v1, %v309_v2  ;;  %v3602_v16 = vcombine.low %v305_v1, %v309_v2 }
  0x70   :  { %1908 = vmatpush1.bf16.msra.mxu1 %v3564_v42  ;;  %v317_v10 = vld [vmem:[#allocation7 + $0x260] sm:$0xff]  ;;  %v314_v13 = vld [vmem:[#allocation7 + $0x248] sm:$0xff]  ;;  %v3605_v15 = vcombine.high %v306_v5, %v310_v6  ;;  %v3604_v20 = vcombine.low %v306_v5, %v310_v6 }
  0x71   :  { %1909 = vmatprep.subr.bf16.mxu1 %v3573_v45  ;;  %v318_v14 = vld [vmem:[#allocation7 + $0x268] sm:$0xff]  ;;  %v321_v17 = vld [vmem:[#allocation7 + $0x280] sm:$0xff]  ;;  %v3611_v19 = vcombine.high %v313_v9, %v317_v10  ;;  %v3610_v24 = vcombine.low %v313_v9, %v317_v10 }
  0x72   :  { %1828 = vmatpush1.bf16.msra.mxu0 %v3570_v46  ;;  %v325_v18 = vld [vmem:[#allocation7 + $0x2a0] sm:$0xff]  ;;  %v322_v21 = vld [vmem:[#allocation7 + $0x288] sm:$0xff]  ;;  %v3613_v23 = vcombine.high %v314_v13, %v318_v14  ;;  %v3612_v28 = vcombine.low %v314_v13, %v318_v14  ;;  %v107_v14 = vlaneseq }
  0x73   :  { %1829 = vmatprep.subr.bf16.mxu0 %v3579_v49  ;;  %v326_v22 = vld [vmem:[#allocation7 + $0x2a8] sm:$0xff]  ;;  %v329_v25 = vld [vmem:[#allocation7 + $0x2c0] sm:$0xff]  ;;  %v3619_v27 = vcombine.high %v321_v17, %v325_v18  ;;  %v3618_v32 = vcombine.low %v321_v17, %v325_v18  ;;  %v4556_v17 = vld [vmem:[%s4664_s2] sm:$0xf] }
  0x74   :  { %1910 = vmatpush1.bf16.msra.mxu1 %v3572_v51  ;;  %v333_v26 = vld [vmem:[#allocation7 + $0x2e0] sm:$0xff]  ;;  %v330_v29 = vld [vmem:[#allocation7 + $0x2c8] sm:$0xff]  ;;  %v3621_v31 = vcombine.high %v322_v21, %v326_v22  ;;  %v3620_v36 = vcombine.low %v322_v21, %v326_v22 }
  0x75   :  { %1911 = vmatprep.subr.bf16.mxu1 %v3581_v55  ;;  %v334_v30 = vld [vmem:[#allocation7 + $0x2e8] sm:$0xff]  ;;  %v337_v33 = vld [vmem:[#allocation7 + $0x300] sm:$0xff]  ;;  %v3627_v35 = vcombine.high %v329_v25, %v333_v26  ;;  %v3626_v40 = vcombine.low %v329_v25, %v333_v26 }
  0x76   :  { %1830 = vmatpush1.bf16.msra.mxu0 %v3578_v56  ;;  %v341_v34 = vld [vmem:[#allocation7 + $0x320] sm:$0xff]  ;;  %v338_v37 = vld [vmem:[#allocation7 + $0x308] sm:$0xff]  ;;  %v3629_v39 = vcombine.high %v330_v29, %v334_v30  ;;  %v3628_v44 = vcombine.low %v330_v29, %v334_v30 }
  0x77   :  { %1831 = vmatprep.subr.bf16.mxu0 %v3587_v59  ;;  %v342_v38 = vld [vmem:[#allocation7 + $0x328] sm:$0xff]  ;;  %v345_v41 = vld [vmem:[#allocation7 + $0x340] sm:$0xff]  ;;  %v3635_v43 = vcombine.high %v337_v33, %v341_v34  ;;  %v3634_v48 = vcombine.low %v337_v33, %v341_v34 }
  0x78   :  { %1912 = vmatpush1.bf16.msra.mxu1 %v3580_v60  ;;  %v349_v42 = vld [vmem:[#allocation7 + $0x360] sm:$0xff]  ;;  %v346_v45 = vld [vmem:[#allocation7 + $0x348] sm:$0xff]  ;;  %v3637_v47 = vcombine.high %v338_v37, %v342_v38  ;;  %v3636_v50 = vcombine.low %v338_v37, %v342_v38 }
  0x79   :  { %1913 = vmatprep.subr.bf16.mxu1 %v3589_v63  ;;  %v350_v46 = vld [vmem:[#allocation7 + $0x368] sm:$0xff]  ;;  %v3643_v49 = vcombine.high %v345_v41, %v349_v42  ;;  %v3642_v52 = vcombine.low %v345_v41, %v349_v42  ;;  %v353_v54 = vld [vmem:[#allocation7 + $0x380] sm:$0xff] }
  0x7a   :  { %1832 = vmatpush1.bf16.msra.mxu0 %v3586_v0  ;;  %v3645_v51 = vcombine.high %v346_v45, %v350_v46  ;;  %v3644_v53 = vcombine.low %v346_v45, %v350_v46  ;;  %v357_v55 = vld [vmem:[#allocation7 + $0x3a0] sm:$0xff]  ;;  %v354_v56 = vld [vmem:[#allocation7 + $0x388] sm:$0xff] }
  0x7b   :  { %1833 = vmatprep.subr.bf16.mxu0 %v3595_v3  ;;  %v3651_v57 = vcombine.high %v353_v54, %v357_v55  ;;  %v358_v58 = vld [vmem:[#allocation7 + $0x3a8] sm:$0xff]  ;;  %v3650_v59 = vcombine.low %v353_v54, %v357_v55  ;;  %v361_v62 = vld [vmem:[#allocation7 + $0x3c0] sm:$0xff] }
  0x7c   :  { %1914 = vmatpush1.bf16.msra.mxu1 %v3588_v4  ;;  %v3652_v60 = vcombine.low %v354_v56, %v358_v58  ;;  %v3653_v61 = vcombine.high %v354_v56, %v358_v58  ;;  %v365_v63 = vld [vmem:[#allocation7 + $0x3e0] sm:$0xff]  ;;  %v362_v0 = vld [vmem:[#allocation7 + $0x3c8] sm:$0xff] }
  0x7d   :  { %1915 = vmatprep.subr.bf16.mxu1 %v3597_v7  ;;  %v3659_v1 = vcombine.high %v361_v62, %v365_v63  ;;  %v366_v2 = vld [vmem:[#allocation7 + $0x3e8] sm:$0xff]  ;;  %v3658_v3 = vcombine.low %v361_v62, %v365_v63  ;;  %v369_v6 = vld [vmem:[#allocation7 + $0x400] sm:$0xff] }
  0x7e   :  { %1834 = vmatpush1.bf16.msra.mxu0 %v3594_v8  ;;  %v3660_v4 = vcombine.low %v362_v0, %v366_v2  ;;  %v3661_v5 = vcombine.high %v362_v0, %v366_v2  ;;  %v373_v7 = vld [vmem:[#allocation7 + $0x420] sm:$0xff]  ;;  %v370_v8 = vld [vmem:[#allocation7 + $0x408] sm:$0xff] }
  0x7f   :  { %1835 = vmatprep.subr.bf16.mxu0 %v3603_v11  ;;  %v3667_v9 = vcombine.high %v369_v6, %v373_v7  ;;  %v374_v10 = vld [vmem:[#allocation7 + $0x428] sm:$0xff]  ;;  %v3666_v11 = vcombine.low %v369_v6, %v373_v7  ;;  %v381_v34 = vld [vmem:[#allocation7 + $0x460] sm:$0xff] }
  0x80   :  { %1916 = vmatpush1.bf16.msra.mxu1 %v3596_v12  ;;  %v3668_v12 = vcombine.low %v370_v8, %v374_v10  ;;  %v3669_v13 = vcombine.high %v370_v8, %v374_v10  ;;  %v385_v45 = vld [vmem:[#allocation7 + $0x480] sm:$0xff]  ;;  %v394_v56 = vld [vmem:[#allocation7 + $0x4c8] sm:$0xff] }
  0x81   :  { %1917 = vmatprep.subr.bf16.mxu1 %v3605_v15  ;;  %v4548_v15 = vshrl.u32 %v107_v14, 7  ;;  %v389_v46 = vld [vmem:[#allocation7 + $0x4a0] sm:$0xff]  ;;  %v402_v0 = vld [vmem:[#allocation7 + $0x508] sm:$0xff] }
  0x82   :  { %1836 = vmatpush1.bf16.msra.mxu0 %v3602_v16  ;;  %v393_v54 = vld [vmem:[#allocation7 + $0x4c0] sm:$0xff]  ;;  %v3682_v58 = vcombine.low %v385_v45, %v389_v46  ;;  %v410_v8 = vld [vmem:[#allocation7 + $0x548] sm:$0xff] }
  0x83   :  { %1837 = vmatprep.subr.bf16.mxu0 %v3611_v19  ;;  %v4551_v16 = vsub.s32 0, %v4548_v15  ;;  %v4559_v18 = vsub.s32 1, %v4548_v15  ;;  %v4562_v19 = vsub.s32 3, %v4548_v15  ;;  %v397_v55 = vld [vmem:[#allocation7 + $0x4e0] sm:$0xff] }
  0x84   :  { %1918 = vmatpush1.bf16.msra.mxu1 %v3604_v20  ;;  %v401_v62 = vld [vmem:[#allocation7 + $0x500] sm:$0xff]  ;;  %v3690_v2 = vcombine.low %v393_v54, %v397_v55 }
  0x85   :  { %1919 = vmatprep.subr.bf16.mxu1 %v3613_v23  ;;  %v110_v20 = vrot.slane %v4556_v17, %v4551_v16  ;;  %v114_v21 = vrot.slane %v4556_v17, %v4559_v18  ;;  %v122_v23 = vrot.slane %v4556_v17, %v4562_v19  ;;  %v405_v63 = vld [vmem:[#allocation7 + $0x520] sm:$0xff] }
  0x86   :  { %1838 = vmatpush1.bf16.msra.mxu0 %v3610_v24  ;;  %v409_v6 = vld [vmem:[#allocation7 + $0x540] sm:$0xff]  ;;  %v3698_v10 = vcombine.low %v401_v62, %v405_v63 }
  0x87   :  { %1839 = vmatprep.subr.bf16.mxu0 %v3619_v27  ;;  %v413_v7 = vld [vmem:[#allocation7 + $0x560] sm:$0xff] }
  0x88   :  { %1920 = vmatpush1.bf16.msra.mxu1 %v3612_v28 }
  0x89   :  { %1921 = vmatprep.subr.bf16.mxu1 %v3621_v31  ;;  %v377_v31 = vld [vmem:[#allocation7 + $0x440] sm:$0xff] }
  0x8a   :  { %1840 = vmatpush1.bf16.msra.mxu0 %v3618_v32 }
  0x8b   :  { %1841 = vmatprep.subr.bf16.mxu0 %v3627_v35  ;;  %v378_v35 = vld [vmem:[#allocation7 + $0x448] sm:$0xff] }
  0x8c   :  { %1922 = vmatpush1.bf16.msra.mxu1 %v3620_v36  ;;  %v382_v36 = vld [vmem:[#allocation7 + $0x468] sm:$0xff] }
  0x8d   :  { %1923 = vmatprep.subr.bf16.mxu1 %v3629_v39 }
  0x8e   :  { %1842 = vmatpush1.bf16.msra.mxu0 %v3626_v40 }
  0x8f   :  { %1843 = vmatprep.subr.bf16.mxu0 %v3635_v43  ;;  %v3675_v43 = vcombine.high %v377_v31, %v381_v34 }
  0x90   :  { %1924 = vmatpush1.bf16.msra.mxu1 %v3628_v44  ;;  %v3677_v44 = vcombine.high %v378_v35, %v382_v36 }
  0x91   :  { %1925 = vmatprep.subr.bf16.mxu1 %v3637_v47  ;;  %v386_v47 = vld [vmem:[#allocation7 + $0x488] sm:$0xff] }
  0x92   :  { %1844 = vmatpush1.bf16.msra.mxu0 %v3634_v48  ;;  %v390_v48 = vld [vmem:[#allocation7 + $0x4a8] sm:$0xff] }
  0x93   :  { %1845 = vmatprep.subr.bf16.mxu0 %v3643_v49 }
  0x94   :  { %1926 = vmatpush1.bf16.msra.mxu1 %v3636_v50  ;;  %v3674_v50 = vcombine.low %v377_v31, %v381_v34  ;;  %v426_v31 = vld [vmem:[#allocation7 + $0x5c8] sm:$0xff] }
  0x95   :  { %1927 = vmatprep.subr.bf16.mxu1 %v3645_v51  ;;  %v3676_v51 = vcombine.low %v378_v35, %v382_v36 }
  0x96   :  { %1846 = vmatpush1.bf16.msra.mxu0 %v3642_v52  ;;  %v3683_v52 = vcombine.high %v385_v45, %v389_v46 }
  0x97   :  { %1847 = vmatprep.subr.bf16.mxu0 %v3651_v57  ;;  %v398_v57 = vld [vmem:[#allocation7 + $0x4e8] sm:$0xff] }
  0x98   :  { %1928 = vmatpush1.bf16.msra.mxu1 %v3644_v53  ;;  %v3685_v53 = vcombine.high %v386_v47, %v390_v48 }
  0x99   :  { %1929 = vmatprep.subr.bf16.mxu1 %v3653_v61  ;;  %v3693_v61 = vcombine.high %v394_v56, %v398_v57 }
  0x9a   :  { %1848 = vmatpush1.bf16.msra.mxu0 %v3650_v59  ;;  %v3684_v59 = vcombine.low %v386_v47, %v390_v48  ;;  %v441_v47 = vld [vmem:[#allocation7 + $0x640] sm:$0xff] }
  0x9b   :  { %1849 = vmatprep.subr.bf16.mxu0 %v3659_v1  ;;  %v406_v1 = vld [vmem:[#allocation7 + $0x528] sm:$0xff]  ;;  %v445_v48 = vld [vmem:[#allocation7 + $0x660] sm:$0xff] }
  0x9c   :  { %1930 = vmatpush1.bf16.msra.mxu1 %v3652_v60  ;;  %v3691_v60 = vcombine.high %v393_v54, %v397_v55  ;;  %v3739_v54 = vcombine.high %v441_v47, %v445_v48 }
  0x9d   :  { %1931 = vmatprep.subr.bf16.mxu1 %v3661_v5  ;;  %v3701_v5 = vcombine.high %v402_v0, %v406_v1 }
  0x9e   :  { %1850 = vmatpush1.bf16.msra.mxu0 %v3658_v3  ;;  %v3692_v3 = vcombine.low %v394_v56, %v398_v57  ;;  %v449_v56 = vld [vmem:[#allocation7 + $0x680] sm:$0xff] }
  0x9f   :  { %1860 = vmatprep.subr.bf16.mxu0 %v3667_v9  ;;  %v414_v9 = vld [vmem:[#allocation7 + $0x568] sm:$0xff]  ;;  %v453_v57 = vld [vmem:[#allocation7 + $0x6a0] sm:$0xff] }
  0xa0   :  { %1932 = vmatpush1.bf16.msra.mxu1 %v3660_v4  ;;  %v3699_v4 = vcombine.high %v401_v62, %v405_v63  ;;  %v3747_v62 = vcombine.high %v449_v56, %v453_v57 }
  0xa1   :  { %1942 = vmatprep.subr.bf16.mxu1 %v3669_v13  ;;  %v3709_v13 = vcombine.high %v410_v8, %v414_v9 }
 0x134   :  { %v185_v22 = vpop.f32.mrb[0].mxu0 }
 0x135   :  { %v186_v24 = vadd.f32 %v185_v22, %v110_v20  ;;  %v187_v25 = vpop.f32.mrb[1].mxu0  ;;  %v417_v20 = vld [vmem:[#allocation7 + $0x580] sm:$0xff]  ;;  %v418_v22 = vld [vmem:[#allocation7 + $0x588] sm:$0xff] }
 0x136   :  { %v188_v26 = vadd.f32 %v187_v25, %v114_v21  ;;  %v189_v27 = vpop.f32.mrb[2].mxu0  ;;  %v4570_v28 = vpop.f32.mrb[0].mxu1  ;;  %v421_v21 = vld [vmem:[#allocation7 + $0x5a0] sm:$0xff]  ;;  %v3708_v25 = vcombine.low %v410_v8, %v414_v9 }
 0x137   :  { %v233_v29 = vmax.f32 %v186_v24, 0.0  ;;  %v190_v30 = vpop.f32.mrb[3].mxu0  ;;  %v228_v32 = vpop.f32.mrb[1].mxu1  ;;  %v3706_v24 = vcombine.low %v409_v6, %v413_v7  ;;  %v465_v8 = vld [vmem:[#allocation7 + $0x700] sm:$0xff] }
 0x138   :  { %v234_v33 = vmax.f32 %v188_v26, 0.0  ;;  %v229_v37 = vadd.f32 %v228_v32, %v122_v23  ;;  %v230_v38 = vpop.f32.mrb[2].mxu1  ;;  %v422_v23 = vld [vmem:[#allocation7 + $0x5a8] sm:$0xff]  ;;  %v3715_v26 = vcombine.high %v417_v20, %v421_v21  ;;  %v429_v30 = vld [vmem:[#allocation7 + $0x5e0] sm:$0xff] }
 0x139   :  { %v231_v39 = vpop.f32.mrb[3].mxu1  ;;  %v4574_v42 = vpack.c.bf16 %v233_v29, %v233_v29  ;;  %v3717_v27 = vcombine.high %v418_v22, %v422_v23  ;;  %v425_v29 = vld [vmem:[#allocation7 + $0x5c0] sm:$0xff]  ;;  %v430_v32 = vld [vmem:[#allocation7 + $0x5e8] sm:$0xff]  ;;  %v3716_v34 = vcombine.low %v418_v22, %v422_v23 }
 0x13a   :  { %v4572_v40 = vpack.c.bf16 %v234_v33, %v234_v33  ;;  %v236_v41 = vmax.f32 %v229_v37, 0.0  ;;  %v3714_v33 = vcombine.low %v417_v20, %v421_v21  ;;  %v3723_v35 = vcombine.high %v425_v29, %v429_v30  ;;  %v433_v37 = vld [vmem:[#allocation7 + $0x600] sm:$0xff]  ;;  %v434_v39 = vld [vmem:[#allocation7 + $0x608] sm:$0xff] }
 0x13b   :  { %v3725_v36 = vcombine.high %v426_v31, %v430_v32  ;;  %v437_v38 = vld [vmem:[#allocation7 + $0x620] sm:$0xff] }
 0x13c   :  { %1851 = vmatprep.mubr.bf16.mxu0 %v4572_v40  ;;  %1933 = vmatprep.mubr.bf16.mxu1 %v4572_v40  ;;  %v4578_v49 = vpack.c.bf16 %v236_v41, %v236_v41  ;;  %v438_v41 = vld [vmem:[#allocation7 + $0x628] sm:$0xff]  ;;  %v3731_v45 = vcombine.high %v433_v37, %v437_v38  ;;  %v469_v9 = vld [vmem:[#allocation7 + $0x720] sm:$0xff] }
 0x13d   :  { %1852 = vmatmul.mubr.bf16.vlgmr.msra.gmra.mrb[4].mxu0 %v4574_v42  ;;  %1934 = vmatmul.mubr.bf16.vlgmr.msra.gmra.mrb[4].mxu1 %v4574_v42  ;;  %v3733_v46 = vcombine.high %v434_v39, %v438_v41  ;;  %v3763_v20 = vcombine.high %v465_v8, %v469_v9  ;;  %v473_v22 = vld [vmem:[#allocation7 + $0x740] sm:$0xff] }
 0x13e   :  { %1861 = vmatpush1.bf16.msra.mxu0 %v3666_v11  ;;  %1943 = vmatpush1.bf16.msra.mxu1 %v3668_v12  ;;  %v3700_v11 = vcombine.low %v402_v0, %v406_v1  ;;  %v3707_v12 = vcombine.high %v409_v6, %v413_v7  ;;  %v457_v0 = vld [vmem:[#allocation7 + $0x6c0] sm:$0xff] }
 0x13f   :  { %1862 = vmatprep.subr.bf16.mxu0 %v3675_v43  ;;  %1944 = vmatprep.subr.bf16.mxu1 %v3677_v44  ;;  %v3722_v43 = vcombine.low %v425_v29, %v429_v30  ;;  %v3724_v44 = vcombine.low %v426_v31, %v430_v32  ;;  %v461_v1 = vld [vmem:[#allocation7 + $0x6e0] sm:$0xff] }
 0x140   :  { %1892 = vmatprep.mubr.bf16.mxu0 %v4578_v49  ;;  %1974 = vmatprep.mubr.bf16.mxu1 %v4578_v49  ;;  %v3755_v6 = vcombine.high %v457_v0, %v461_v1  ;;  %v477_v23 = vld [vmem:[#allocation7 + $0x760] sm:$0xff] }
 0x141   :  { %v3771_v30 = vcombine.high %v473_v22, %v477_v23  ;;  %v481_v32 = vld [vmem:[#allocation7 + $0x780] sm:$0xff] }
 0x142   :  { %1863 = vmatpush1.bf16.msra.mxu0 %v3674_v50  ;;  %1945 = vmatpush1.bf16.msra.mxu1 %v3676_v51  ;;  %v442_v50 = vld [vmem:[#allocation7 + $0x648] sm:$0xff] }
 0x143   :  { %1864 = vmatprep.subr.bf16.mxu0 %v3683_v52  ;;  %1946 = vmatprep.subr.bf16.mxu1 %v3685_v53  ;;  %v446_v51 = vld [vmem:[#allocation7 + $0x668] sm:$0xff]  ;;  %v3730_v52 = vcombine.low %v433_v37, %v437_v38  ;;  %v3732_v53 = vcombine.low %v434_v39, %v438_v41  ;;  %v3770_v37 = vcombine.low %v473_v22, %v477_v23  ;;  %v272_v22 = vld [vmem:[#allocation7 + $0xf8] sm:$0xff] }
 0x144   :  { %v3741_v55 = vcombine.high %v442_v50, %v446_v51 }
 0x146   :  { %1865 = vmatpush1.bf16.msra.mxu0 %v3682_v58  ;;  %1947 = vmatpush1.bf16.msra.mxu1 %v3684_v59  ;;  %v450_v58 = vld [vmem:[#allocation7 + $0x688] sm:$0xff] }
 0x147   :  { %1866 = vmatprep.subr.bf16.mxu0 %v3691_v60  ;;  %1948 = vmatprep.subr.bf16.mxu1 %v3693_v61  ;;  %v454_v59 = vld [vmem:[#allocation7 + $0x6a8] sm:$0xff]  ;;  %v3738_v60 = vcombine.low %v441_v47, %v445_v48  ;;  %v3740_v61 = vcombine.low %v442_v50, %v446_v51 }
 0x148   :  { %v3749_v63 = vcombine.high %v450_v58, %v454_v59 }
 0x14a   :  { %1867 = vmatpush1.bf16.msra.mxu0 %v3690_v2  ;;  %1949 = vmatpush1.bf16.msra.mxu1 %v3692_v3  ;;  %v458_v2 = vld [vmem:[#allocation7 + $0x6c8] sm:$0xff] }
 0x14b   :  { %1868 = vmatprep.subr.bf16.mxu0 %v3699_v4  ;;  %1950 = vmatprep.subr.bf16.mxu1 %v3701_v5  ;;  %v462_v3 = vld [vmem:[#allocation7 + $0x6e8] sm:$0xff]  ;;  %v3746_v4 = vcombine.low %v449_v56, %v453_v57  ;;  %v3748_v5 = vcombine.low %v450_v58, %v454_v59 }
 0x14c   :  { %v3757_v7 = vcombine.high %v458_v2, %v462_v3 }
 0x14e   :  { %1869 = vmatpush1.bf16.msra.mxu0 %v3698_v10  ;;  %1951 = vmatpush1.bf16.msra.mxu1 %v3700_v11  ;;  %v466_v10 = vld [vmem:[#allocation7 + $0x708] sm:$0xff] }
 0x14f   :  { %1870 = vmatprep.subr.bf16.mxu0 %v3707_v12  ;;  %1952 = vmatprep.subr.bf16.mxu1 %v3709_v13  ;;  %v470_v11 = vld [vmem:[#allocation7 + $0x728] sm:$0xff]  ;;  %v3754_v12 = vcombine.low %v457_v0, %v461_v1  ;;  %v3756_v13 = vcombine.low %v458_v2, %v462_v3  ;;  %v256_v0 = vld [vmem:[#allocation7 + $0x78] sm:$0xff] }
 0x150   :  { %v3765_v21 = vcombine.high %v466_v10, %v470_v11  ;;  %v3764_v29 = vcombine.low %v466_v10, %v470_v11 }
 0x152   :  { %1871 = vmatpush1.bf16.msra.mxu0 %v3706_v24  ;;  %1953 = vmatpush1.bf16.msra.mxu1 %v3708_v25  ;;  %v474_v24 = vld [vmem:[#allocation7 + $0x748] sm:$0xff] }
 0x153   :  { %1872 = vmatprep.subr.bf16.mxu0 %v3715_v26  ;;  %1954 = vmatprep.subr.bf16.mxu1 %v3717_v27  ;;  %v478_v25 = vld [vmem:[#allocation7 + $0x768] sm:$0xff]  ;;  %v4585_v26 = vsub.s32 2, %v4548_v15  ;;  %v3762_v27 = vcombine.low %v465_v8, %v469_v9  ;;  %v264_v8 = vld [vmem:[#allocation7 + $0xb8] sm:$0xff] }
 0x154   :  { %v3773_v31 = vcombine.high %v474_v24, %v478_v25  ;;  %v3772_v38 = vcombine.low %v474_v24, %v478_v25 }
 0x156   :  { %1873 = vmatpush1.bf16.msra.mxu0 %v3714_v33  ;;  %1955 = vmatpush1.bf16.msra.mxu1 %v3716_v34  ;;  %v485_v33 = vld [vmem:[#allocation7 + $0x7a0] sm:$0xff]  ;;  %v482_v34 = vld [vmem:[#allocation7 + $0x788] sm:$0xff] }
 0x157   :  { %1874 = vmatprep.subr.bf16.mxu0 %v3723_v35  ;;  %1956 = vmatprep.subr.bf16.mxu1 %v3725_v36  ;;  %v486_v35 = vld [vmem:[#allocation7 + $0x7a8] sm:$0xff]  ;;  %v118_v36 = vrot.slane %v4556_v17, %v4585_v26  ;;  %v3779_v39 = vcombine.high %v481_v32, %v485_v33  ;;  %v3778_v48 = vcombine.low %v481_v32, %v485_v33 }
 0x158   :  { %v3781_v41 = vcombine.high %v482_v34, %v486_v35  ;;  %v3780_v50 = vcombine.low %v482_v34, %v486_v35 }
 0x159   :  { %v227_v47 = vadd.f32 %v4570_v28, %v118_v36  ;;  %v283_v36 = vld [vmem:[#allocation7 + $0x150] sm:$0xff] }
 0x15a   :  { %1875 = vmatpush1.bf16.msra.mxu0 %v3722_v43  ;;  %1957 = vmatpush1.bf16.msra.mxu1 %v3724_v44  ;;  %v489_v43 = vld [vmem:[#allocation7 + $0x7c0] sm:$0xff] }
 0x15b   :  { %1876 = vmatprep.subr.bf16.mxu0 %v3731_v45  ;;  %1958 = vmatprep.subr.bf16.mxu1 %v3733_v46  ;;  %v493_v44 = vld [vmem:[#allocation7 + $0x7e0] sm:$0xff]  ;;  %v490_v45 = vld [vmem:[#allocation7 + $0x7c8] sm:$0xff]  ;;  %v235_v56 = vmax.f32 %v227_v47, 0.0  ;;  %v295_v47 = vld [vmem:[#allocation7 + $0x1b0] sm:$0xff] }
 0x15c   :  { %v494_v46 = vld [vmem:[#allocation7 + $0x7e8] sm:$0xff]  ;;  %v3787_v17 = vcombine.high %v489_v43, %v493_v44  ;;  %v3786_v57 = vcombine.low %v489_v43, %v493_v44 }
 0x15d   :  { %v3789_v51 = vcombine.high %v490_v45, %v494_v46  ;;  %v3788_v58 = vcombine.low %v490_v45, %v494_v46  ;;  %v291_v46 = vld [vmem:[#allocation7 + $0x190] sm:$0xff] }
 0x15e   :  { %1877 = vmatpush1.bf16.msra.mxu0 %v3730_v52  ;;  %1959 = vmatpush1.bf16.msra.mxu1 %v3732_v53  ;;  %v243_v52 = vld [vmem:[#allocation7 + $0x10] sm:$0xff] }
 0x15f   :  { %1878 = vmatprep.subr.bf16.mxu0 %v3739_v54  ;;  %1960 = vmatprep.subr.bf16.mxu1 %v3741_v55  ;;  %v247_v53 = vld [vmem:[#allocation7 + $0x30] sm:$0xff]  ;;  %v244_v54 = vld [vmem:[#allocation7 + $0x18] sm:$0xff] }
 0x160   :  { %v248_v55 = vld [vmem:[#allocation7 + $0x38] sm:$0xff]  ;;  %v3543_v28 = vcombine.high %v243_v52, %v247_v53  ;;  %v3542_v1 = vcombine.low %v243_v52, %v247_v53  ;;  %v3591_v52 = vcombine.high %v291_v46, %v295_v47 }
 0x161   :  { %v3545_v59 = vcombine.high %v244_v54, %v248_v55  ;;  %v3544_v2 = vcombine.low %v244_v54, %v248_v55  ;;  %v299_v54 = vld [vmem:[#allocation7 + $0x1d0] sm:$0xff] }
 0x162   :  { %1879 = vmatpush1.bf16.msra.mxu0 %v3738_v60  ;;  %1961 = vmatpush1.bf16.msra.mxu1 %v3740_v61  ;;  %v251_v60 = vld [vmem:[#allocation7 + $0x50] sm:$0xff]  ;;  %v4590_v61 = vpack.c.bf16 %v235_v56, %v235_v56  ;;  %v300_v56 = vld [vmem:[#allocation7 + $0x1d8] sm:$0xff] }
 0x163   :  { %1880 = vmatprep.subr.bf16.mxu0 %v3747_v62  ;;  %1962 = vmatprep.subr.bf16.mxu1 %v3749_v63  ;;  %v255_v62 = vld [vmem:[#allocation7 + $0x70] sm:$0xff]  ;;  %v252_v63 = vld [vmem:[#allocation7 + $0x58] sm:$0xff] }
 0x164   :  { %v3551_v3 = vcombine.high %v251_v60, %v255_v62  ;;  %v3550_v9 = vcombine.low %v251_v60, %v255_v62  ;;  %v3552_v10 = vcombine.low %v252_v63, %v256_v0  ;;  %v303_v55 = vld [vmem:[#allocation7 + $0x1f0] sm:$0xff] }
 0x165   :  { %v307_v62 = vld [vmem:[#allocation7 + $0x210] sm:$0xff] }
 0x166   :  { %1881 = vmatpush1.bf16.msra.mxu0 %v3746_v4  ;;  %1963 = vmatpush1.bf16.msra.mxu1 %v3748_v5  ;;  %v3553_v4 = vcombine.high %v252_v63, %v256_v0  ;;  %v259_v5 = vld [vmem:[#allocation7 + $0x90] sm:$0xff]  ;;  %v308_v0 = vld [vmem:[#allocation7 + $0x218] sm:$0xff] }
 0x167   :  { %1882 = vmatprep.subr.bf16.mxu0 %v3755_v6  ;;  %1964 = vmatprep.subr.bf16.mxu1 %v3757_v7  ;;  %v263_v6 = vld [vmem:[#allocation7 + $0xb0] sm:$0xff]  ;;  %v260_v7 = vld [vmem:[#allocation7 + $0x98] sm:$0xff] }
 0x168   :  { %v3559_v11 = vcombine.high %v259_v5, %v263_v6  ;;  %v3558_v23 = vcombine.low %v259_v5, %v263_v6  ;;  %v3560_v24 = vcombine.low %v260_v7, %v264_v8  ;;  %v311_v63 = vld [vmem:[#allocation7 + $0x230] sm:$0xff] }
 0x169   :  { %v315_v6 = vld [vmem:[#allocation7 + $0x250] sm:$0xff] }
 0x16a   :  { %1883 = vmatpush1.bf16.msra.mxu0 %v3754_v12  ;;  %1965 = vmatpush1.bf16.msra.mxu1 %v3756_v13  ;;  %v3561_v12 = vcombine.high %v260_v7, %v264_v8  ;;  %v267_v13 = vld [vmem:[#allocation7 + $0xd0] sm:$0xff]  ;;  %v316_v8 = vld [vmem:[#allocation7 + $0x258] sm:$0xff] }
 0x16b   :  { %1884 = vmatprep.subr.bf16.mxu0 %v3763_v20  ;;  %1966 = vmatprep.subr.bf16.mxu1 %v3765_v21  ;;  %v271_v20 = vld [vmem:[#allocation7 + $0xf0] sm:$0xff]  ;;  %v268_v21 = vld [vmem:[#allocation7 + $0xd8] sm:$0xff] }
 0x16c   :  { %v3567_v25 = vcombine.high %v267_v13, %v271_v20  ;;  %v3566_v32 = vcombine.low %v267_v13, %v271_v20  ;;  %v3568_v33 = vcombine.low %v268_v21, %v272_v22  ;;  %v319_v7 = vld [vmem:[#allocation7 + $0x270] sm:$0xff] }
 0x16d   :  { %v323_v20 = vld [vmem:[#allocation7 + $0x290] sm:$0xff] }
 0x16e   :  { %1885 = vmatpush1.bf16.msra.mxu0 %v3762_v27  ;;  %1967 = vmatpush1.bf16.msra.mxu1 %v3764_v29  ;;  %v3569_v27 = vcombine.high %v268_v21, %v272_v22  ;;  %v275_v29 = vld [vmem:[#allocation7 + $0x110] sm:$0xff]  ;;  %v324_v22 = vld [vmem:[#allocation7 + $0x298] sm:$0xff] }
 0x16f   :  { %1886 = vmatprep.subr.bf16.mxu0 %v3771_v30  ;;  %1968 = vmatprep.subr.bf16.mxu1 %v3773_v31  ;;  %v279_v30 = vld [vmem:[#allocation7 + $0x130] sm:$0xff]  ;;  %v280_v31 = vld [vmem:[#allocation7 + $0x138] sm:$0xff] }
 0x170   :  { %v3575_v34 = vcombine.high %v275_v29, %v279_v30  ;;  %v327_v21 = vld [vmem:[#allocation7 + $0x2b0] sm:$0xff] }
 0x172   :  { %1887 = vmatpush1.bf16.msra.mxu0 %v3770_v37  ;;  %1969 = vmatpush1.bf16.msra.mxu1 %v3772_v38  ;;  %v287_v37 = vld [vmem:[#allocation7 + $0x170] sm:$0xff]  ;;  %v284_v38 = vld [vmem:[#allocation7 + $0x158] sm:$0xff] }
 0x173   :  { %1888 = vmatprep.subr.bf16.mxu0 %v3779_v39  ;;  %1970 = vmatprep.subr.bf16.mxu1 %v3781_v41  ;;  %v288_v39 = vld [vmem:[#allocation7 + $0x178] sm:$0xff]  ;;  %v3574_v41 = vcombine.low %v275_v29, %v279_v30  ;;  %v3583_v44 = vcombine.high %v283_v36, %v287_v37  ;;  %v331_v30 = vld [vmem:[#allocation7 + $0x2d0] sm:$0xff] }
 0x174   :  { %v3585_v45 = vcombine.high %v284_v38, %v288_v39 }
 0x176   :  { %1889 = vmatpush1.bf16.msra.mxu0 %v3778_v48  ;;  %1971 = vmatpush1.bf16.msra.mxu1 %v3780_v50  ;;  %v292_v48 = vld [vmem:[#allocation7 + $0x198] sm:$0xff] }
 0x177   :  { %1890 = vmatprep.subr.bf16.mxu0 %v3787_v17  ;;  %1972 = vmatprep.subr.bf16.mxu1 %v3789_v51  ;;  %v296_v50 = vld [vmem:[#allocation7 + $0x1b8] sm:$0xff]  ;;  %v3582_v17 = vcombine.low %v283_v36, %v287_v37  ;;  %v3584_v51 = vcombine.low %v284_v38, %v288_v39  ;;  %v339_v37 = vld [vmem:[#allocation7 + $0x310] sm:$0xff] }
 0x178   :  { %v3593_v53 = vcombine.high %v292_v48, %v296_v50  ;;  %v343_v38 = vld [vmem:[#allocation7 + $0x330] sm:$0xff]  ;;  %v340_v39 = vld [vmem:[#allocation7 + $0x318] sm:$0xff] }
 0x17a   :  { %1891 = vmatpush1.bf16.msra.mxu0 %v3786_v57  ;;  %1973 = vmatpush1.bf16.msra.mxu1 %v3788_v58  ;;  %v304_v57 = vld [vmem:[#allocation7 + $0x1f8] sm:$0xff]  ;;  %v3590_v58 = vcombine.low %v291_v46, %v295_v47  ;;  %v347_v47 = vld [vmem:[#allocation7 + $0x350] sm:$0xff] }
 0x17b   :  { %1983 = vmatprep.subr.bf16.mxu0 %v3543_v28  ;;  %2065 = vmatprep.subr.bf16.mxu1 %v3545_v59  ;;  %v3592_v28 = vcombine.low %v292_v48, %v296_v50  ;;  %v3599_v59 = vcombine.high %v299_v54, %v303_v55  ;;  %v3601_v60 = vcombine.high %v300_v56, %v304_v57  ;;  %v351_v48 = vld [vmem:[#allocation7 + $0x370] sm:$0xff]  ;;  %v348_v50 = vld [vmem:[#allocation7 + $0x358] sm:$0xff] }
 0x17d   :  { %1893 = vmatmul.mubr.bf16.vlgmr.msra.gmra.mrb[4].mxu0 %v4590_v61  ;;  %1975 = vmatmul.mubr.bf16.vlgmr.msra.gmra.mrb[4].mxu1 %v4590_v61 }
 0x17e   :  { %1984 = vmatpush1.bf16.msra.mxu0 %v3542_v1  ;;  %2015 = vmatprep.mubr.bf16.mxu0 %v4572_v40  ;;  %v312_v1 = vld [vmem:[#allocation7 + $0x238] sm:$0xff] }
 0x17f   :  { %2066 = vmatpush1.bf16.msra.mxu1 %v3544_v2  ;;  %2097 = vmatprep.mubr.bf16.mxu1 %v4572_v40  ;;  %v276_v40 = vld [vmem:[#allocation7 + $0x118] sm:$0xff]  ;;  %v3598_v2 = vcombine.low %v299_v54, %v303_v55  ;;  %v3609_v5 = vcombine.high %v308_v0, %v312_v1  ;;  %v355_v55 = vld [vmem:[#allocation7 + $0x390] sm:$0xff] }
 0x180   :  { %1985 = vmatprep.subr.bf16.mxu0 %v3551_v3  ;;  %2067 = vmatprep.subr.bf16.mxu1 %v3553_v4  ;;  %v3577_v35 = vcombine.high %v276_v40, %v280_v31  ;;  %v3576_v43 = vcombine.low %v276_v40, %v280_v31  ;;  %v3600_v3 = vcombine.low %v300_v56, %v304_v57  ;;  %v335_v40 = vld [vmem:[#allocation7 + $0x2f0] sm:$0xff]  ;;  %v332_v31 = vld [vmem:[#allocation7 + $0x2d8] sm:$0xff] }
 0x181   :  { %v3607_v4 = vcombine.high %v307_v62, %v311_v63  ;;  %v359_v56 = vld [vmem:[#allocation7 + $0x3b0] sm:$0xff]  ;;  %v356_v57 = vld [vmem:[#allocation7 + $0x398] sm:$0xff] }
 0x182   :  { %1986 = vmatpush1.bf16.msra.mxu0 %v3550_v9  ;;  %v320_v9 = vld [vmem:[#allocation7 + $0x278] sm:$0xff] }
 0x183   :  { %2068 = vmatpush1.bf16.msra.mxu1 %v3552_v10  ;;  %1987 = vmatprep.subr.bf16.mxu0 %v3559_v11  ;;  %v3606_v10 = vcombine.low %v307_v62, %v311_v63  ;;  %v3608_v11 = vcombine.low %v308_v0, %v312_v1  ;;  %v3617_v13 = vcombine.high %v316_v8, %v320_v9  ;;  %v363_v63 = vld [vmem:[#allocation7 + $0x3d0] sm:$0xff]  ;;  %v364_v1 = vld [vmem:[#allocation7 + $0x3d8] sm:$0xff] }
 0x184   :  { %2069 = vmatprep.subr.bf16.mxu1 %v3561_v12  ;;  %v3615_v12 = vcombine.high %v315_v6, %v319_v7  ;;  %v367_v0 = vld [vmem:[#allocation7 + $0x3f0] sm:$0xff] }
 0x186   :  { %1988 = vmatpush1.bf16.msra.mxu0 %v3558_v23  ;;  %v328_v23 = vld [vmem:[#allocation7 + $0x2b8] sm:$0xff] }
 0x187   :  { %2070 = vmatpush1.bf16.msra.mxu1 %v3560_v24  ;;  %1989 = vmatprep.subr.bf16.mxu0 %v3567_v25  ;;  %v3614_v24 = vcombine.low %v315_v6, %v319_v7  ;;  %v3616_v25 = vcombine.low %v316_v8, %v320_v9  ;;  %v3625_v29 = vcombine.high %v324_v22, %v328_v23  ;;  %v371_v7 = vld [vmem:[#allocation7 + $0x410] sm:$0xff]  ;;  %v372_v9 = vld [vmem:[#allocation7 + $0x418] sm:$0xff] }
 0x188   :  { %2071 = vmatprep.subr.bf16.mxu1 %v3569_v27  ;;  %v3623_v27 = vcombine.high %v323_v20, %v327_v21  ;;  %v375_v8 = vld [vmem:[#allocation7 + $0x430] sm:$0xff] }
 0x18a   :  { %1990 = vmatpush1.bf16.msra.mxu0 %v3566_v32  ;;  %v336_v32 = vld [vmem:[#allocation7 + $0x2f8] sm:$0xff] }
 0x18b   :  { %2072 = vmatpush1.bf16.msra.mxu1 %v3568_v33  ;;  %1991 = vmatprep.subr.bf16.mxu0 %v3575_v34  ;;  %v3622_v33 = vcombine.low %v323_v20, %v327_v21  ;;  %v3624_v34 = vcombine.low %v324_v22, %v328_v23  ;;  %v3633_v36 = vcombine.high %v332_v31, %v336_v32  ;;  %v379_v21 = vld [vmem:[#allocation7 + $0x450] sm:$0xff] }
 0x18c   :  { %2073 = vmatprep.subr.bf16.mxu1 %v3577_v35  ;;  %v3631_v35 = vcombine.high %v331_v30, %v335_v40  ;;  %v383_v22 = vld [vmem:[#allocation7 + $0x470] sm:$0xff]  ;;  %v3670_v23 = vcombine.low %v371_v7, %v375_v8 }
 0x18e   :  { %1992 = vmatpush1.bf16.msra.mxu0 %v3574_v41  ;;  %v344_v41 = vld [vmem:[#allocation7 + $0x338] sm:$0xff] }
 0x18f   :  { %2074 = vmatpush1.bf16.msra.mxu1 %v3576_v43  ;;  %1993 = vmatprep.subr.bf16.mxu0 %v3583_v44  ;;  %v3630_v43 = vcombine.low %v331_v30, %v335_v40  ;;  %v3632_v44 = vcombine.low %v332_v31, %v336_v32  ;;  %v3641_v46 = vcombine.high %v340_v39, %v344_v41  ;;  %v387_v30 = vld [vmem:[#allocation7 + $0x490] sm:$0xff]  ;;  %v388_v32 = vld [vmem:[#allocation7 + $0x498] sm:$0xff] }
 0x190   :  { %2075 = vmatprep.subr.bf16.mxu1 %v3585_v45  ;;  %v3639_v45 = vcombine.high %v339_v37, %v343_v38  ;;  %v391_v40 = vld [vmem:[#allocation7 + $0x4b0] sm:$0xff] }
 0x192   :  { %1994 = vmatpush1.bf16.msra.mxu0 %v3582_v17  ;;  %v352_v17 = vld [vmem:[#allocation7 + $0x378] sm:$0xff] }
 0x193   :  { %2076 = vmatpush1.bf16.msra.mxu1 %v3584_v51  ;;  %1995 = vmatprep.subr.bf16.mxu0 %v3591_v52  ;;  %v3638_v51 = vcombine.low %v339_v37, %v343_v38  ;;  %v3640_v52 = vcombine.low %v340_v39, %v344_v41  ;;  %v3649_v54 = vcombine.high %v348_v50, %v352_v17  ;;  %v395_v38 = vld [vmem:[#allocation7 + $0x4d0] sm:$0xff]  ;;  %v396_v41 = vld [vmem:[#allocation7 + $0x4d8] sm:$0xff] }
 0x194   :  { %2077 = vmatprep.subr.bf16.mxu1 %v3593_v53  ;;  %v3647_v53 = vcombine.high %v347_v47, %v351_v48  ;;  %v399_v39 = vld [vmem:[#allocation7 + $0x4f0] sm:$0xff] }
 0x196   :  { %1996 = vmatpush1.bf16.msra.mxu0 %v3590_v58  ;;  %v360_v58 = vld [vmem:[#allocation7 + $0x3b8] sm:$0xff] }
 0x197   :  { %2078 = vmatpush1.bf16.msra.mxu1 %v3592_v28  ;;  %1997 = vmatprep.subr.bf16.mxu0 %v3599_v59  ;;  %v3646_v28 = vcombine.low %v347_v47, %v351_v48  ;;  %v3648_v59 = vcombine.low %v348_v50, %v352_v17  ;;  %v3657_v62 = vcombine.high %v356_v57, %v360_v58  ;;  %v403_v47 = vld [vmem:[#allocation7 + $0x510] sm:$0xff]  ;;  %v404_v50 = vld [vmem:[#allocation7 + $0x518] sm:$0xff] }
 0x198   :  { %2079 = vmatprep.subr.bf16.mxu1 %v3601_v60  ;;  %v3655_v60 = vcombine.high %v355_v55, %v359_v56  ;;  %v407_v48 = vld [vmem:[#allocation7 + $0x530] sm:$0xff]  ;;  %v408_v17 = vld [vmem:[#allocation7 + $0x538] sm:$0xff] }
 0x19a   :  { %1998 = vmatpush1.bf16.msra.mxu0 %v3598_v2  ;;  %v368_v2 = vld [vmem:[#allocation7 + $0x3f8] sm:$0xff] }
 0x19b   :  { %2080 = vmatpush1.bf16.msra.mxu1 %v3600_v3  ;;  %1999 = vmatprep.subr.bf16.mxu0 %v3607_v4  ;;  %v3654_v3 = vcombine.low %v355_v55, %v359_v56  ;;  %v3656_v4 = vcombine.low %v356_v57, %v360_v58  ;;  %v3665_v6 = vcombine.high %v364_v1, %v368_v2  ;;  %v415_v55 = vld [vmem:[#allocation7 + $0x570] sm:$0xff]  ;;  %v412_v56 = vld [vmem:[#allocation7 + $0x558] sm:$0xff] }
 0x19c   :  { %2081 = vmatprep.subr.bf16.mxu1 %v3609_v5  ;;  %v3663_v5 = vcombine.high %v363_v63, %v367_v0  ;;  %v416_v57 = vld [vmem:[#allocation7 + $0x578] sm:$0xff]  ;;  %v3702_v58 = vcombine.low %v403_v47, %v407_v48 }
 0x19e   :  { %2000 = vmatpush1.bf16.msra.mxu0 %v3606_v10  ;;  %v376_v10 = vld [vmem:[#allocation7 + $0x438] sm:$0xff] }
 0x19f   :  { %2082 = vmatpush1.bf16.msra.mxu1 %v3608_v11  ;;  %2001 = vmatprep.subr.bf16.mxu0 %v3615_v12  ;;  %v3662_v11 = vcombine.low %v363_v63, %v367_v0  ;;  %v3664_v12 = vcombine.low %v364_v1, %v368_v2  ;;  %v3673_v20 = vcombine.high %v372_v9, %v376_v10  ;;  %v423_v63 = vld [vmem:[#allocation7 + $0x5b0] sm:$0xff]  ;;  %v420_v0 = vld [vmem:[#allocation7 + $0x598] sm:$0xff] }
 0x1a0   :  { %2083 = vmatprep.subr.bf16.mxu1 %v3617_v13  ;;  %v3671_v13 = vcombine.high %v371_v7, %v375_v8  ;;  %v424_v1 = vld [vmem:[#allocation7 + $0x5b8] sm:$0xff]  ;;  %v431_v7 = vld [vmem:[#allocation7 + $0x5f0] sm:$0xff] }
 0x1a1   :  { %v428_v8 = vld [vmem:[#allocation7 + $0x5d8] sm:$0xff] }
 0x1a2   :  { %2002 = vmatpush1.bf16.msra.mxu0 %v3614_v24  ;;  %v380_v24 = vld [vmem:[#allocation7 + $0x458] sm:$0xff] }
 0x1a3   :  { %2084 = vmatpush1.bf16.msra.mxu1 %v3616_v25  ;;  %2003 = vmatprep.subr.bf16.mxu0 %v3623_v27  ;;  %v384_v25 = vld [vmem:[#allocation7 + $0x478] sm:$0xff]  ;;  %v3672_v27 = vcombine.low %v372_v9, %v376_v10 }
 0x1a4   :  { %2085 = vmatprep.subr.bf16.mxu1 %v3625_v29  ;;  %v3679_v29 = vcombine.high %v379_v21, %v383_v22  ;;  %v3681_v31 = vcombine.high %v380_v24, %v384_v25  ;;  %v432_v9 = vld [vmem:[#allocation7 + $0x5f8] sm:$0xff] }
 0x1a6   :  { %2004 = vmatpush1.bf16.msra.mxu0 %v3622_v33  ;;  %v392_v33 = vld [vmem:[#allocation7 + $0x4b8] sm:$0xff] }
 0x1a7   :  { %2086 = vmatpush1.bf16.msra.mxu1 %v3624_v34  ;;  %2005 = vmatprep.subr.bf16.mxu0 %v3631_v35  ;;  %v3678_v34 = vcombine.low %v379_v21, %v383_v22  ;;  %v3680_v35 = vcombine.low %v380_v24, %v384_v25  ;;  %v3689_v37 = vcombine.high %v388_v32, %v392_v33  ;;  %v439_v21 = vld [vmem:[#allocation7 + $0x630] sm:$0xff]  ;;  %v436_v22 = vld [vmem:[#allocation7 + $0x618] sm:$0xff] }
 0x1a8   :  { %2087 = vmatprep.subr.bf16.mxu1 %v3633_v36  ;;  %v3687_v36 = vcombine.high %v387_v30, %v391_v40  ;;  %v3728_v25 = vcombine.low %v428_v8, %v432_v9 }
 0x1aa   :  { %2006 = vmatpush1.bf16.msra.mxu0 %v3630_v43  ;;  %v400_v43 = vld [vmem:[#allocation7 + $0x4f8] sm:$0xff] }
 0x1ab   :  { %2088 = vmatpush1.bf16.msra.mxu1 %v3632_v44  ;;  %2007 = vmatprep.subr.bf16.mxu0 %v3639_v45  ;;  %v3686_v44 = vcombine.low %v387_v30, %v391_v40  ;;  %v3695_v45 = vcombine.high %v395_v38, %v399_v39  ;;  %v443_v30 = vld [vmem:[#allocation7 + $0x650] sm:$0xff] }
 0x1ac   :  { %2089 = vmatprep.subr.bf16.mxu1 %v3641_v46  ;;  %v3697_v46 = vcombine.high %v396_v41, %v400_v43  ;;  %v447_v40 = vld [vmem:[#allocation7 + $0x670] sm:$0xff] }
 0x1ae   :  { %2008 = vmatpush1.bf16.msra.mxu0 %v3638_v51  ;;  %v3696_v51 = vcombine.low %v396_v41, %v400_v43  ;;  %v456_v41 = vld [vmem:[#allocation7 + $0x6b8] sm:$0xff]  ;;  %v3742_v43 = vcombine.low %v443_v30, %v447_v40 }
 0x1af   :  { %2090 = vmatpush1.bf16.msra.mxu1 %v3640_v52  ;;  %2009 = vmatprep.subr.bf16.mxu0 %v3647_v53  ;;  %v3703_v52 = vcombine.high %v403_v47, %v407_v48  ;;  %v3705_v53 = vcombine.high %v404_v50, %v408_v17  ;;  %v463_v47 = vld [vmem:[#allocation7 + $0x6f0] sm:$0xff]  ;;  %v460_v48 = vld [vmem:[#allocation7 + $0x6d8] sm:$0xff] }
 0x1b0   :  { %2091 = vmatprep.subr.bf16.mxu1 %v3649_v54  ;;  %v411_v54 = vld [vmem:[#allocation7 + $0x550] sm:$0xff] }
 0x1b1   :  { %v3710_v2 = vcombine.low %v411_v54, %v415_v55 }
 0x1b2   :  { %2010 = vmatpush1.bf16.msra.mxu0 %v3646_v28  ;;  %v3704_v28 = vcombine.low %v404_v50, %v408_v17  ;;  %v464_v50 = vld [vmem:[#allocation7 + $0x6f8] sm:$0xff] }
 0x1b3   :  { %2092 = vmatpush1.bf16.msra.mxu1 %v3648_v59  ;;  %2011 = vmatprep.subr.bf16.mxu0 %v3655_v60  ;;  %v3711_v59 = vcombine.high %v411_v54, %v415_v55  ;;  %v3713_v60 = vcombine.high %v412_v56, %v416_v57  ;;  %v471_v54 = vld [vmem:[#allocation7 + $0x730] sm:$0xff]  ;;  %v468_v55 = vld [vmem:[#allocation7 + $0x718] sm:$0xff] }
 0x1b4   :  { %2093 = vmatprep.subr.bf16.mxu1 %v3657_v62  ;;  %v419_v62 = vld [vmem:[#allocation7 + $0x590] sm:$0xff] }
 0x1b5   :  { %v3718_v10 = vcombine.low %v419_v62, %v423_v63 }
 0x1b6   :  { %2012 = vmatpush1.bf16.msra.mxu0 %v3654_v3  ;;  %v3712_v3 = vcombine.low %v412_v56, %v416_v57  ;;  %v472_v56 = vld [vmem:[#allocation7 + $0x738] sm:$0xff] }
 0x1b7   :  { %2094 = vmatpush1.bf16.msra.mxu1 %v3656_v4  ;;  %2013 = vmatprep.subr.bf16.mxu0 %v3663_v5  ;;  %v3719_v4 = vcombine.high %v419_v62, %v423_v63  ;;  %v3721_v5 = vcombine.high %v420_v0, %v424_v1  ;;  %v479_v62 = vld [vmem:[#allocation7 + $0x770] sm:$0xff]  ;;  %v476_v63 = vld [vmem:[#allocation7 + $0x758] sm:$0xff] }
 0x1b8   :  { %2095 = vmatprep.subr.bf16.mxu1 %v3665_v6  ;;  %v427_v6 = vld [vmem:[#allocation7 + $0x5d0] sm:$0xff] }
 0x1b9   :  { %v3726_v24 = vcombine.low %v427_v6, %v431_v7 }
 0x1ba   :  { %2014 = vmatpush1.bf16.msra.mxu0 %v3662_v11  ;;  %v3720_v11 = vcombine.low %v420_v0, %v424_v1  ;;  %v480_v0 = vld [vmem:[#allocation7 + $0x778] sm:$0xff] }
 0x1bb   :  { %2096 = vmatpush1.bf16.msra.mxu1 %v3664_v12  ;;  %2024 = vmatprep.subr.bf16.mxu0 %v3671_v13  ;;  %v3727_v12 = vcombine.high %v427_v6, %v431_v7  ;;  %v3729_v13 = vcombine.high %v428_v8, %v432_v9  ;;  %v487_v6 = vld [vmem:[#allocation7 + $0x7b0] sm:$0xff]  ;;  %v484_v7 = vld [vmem:[#allocation7 + $0x798] sm:$0xff] }
 0x1bc   :  { %2106 = vmatprep.subr.bf16.mxu1 %v3673_v20  ;;  %v435_v20 = vld [vmem:[#allocation7 + $0x610] sm:$0xff]  ;;  %v488_v8 = vld [vmem:[#allocation7 + $0x7b8] sm:$0xff] }
 0x1bd   :  { %2016 = vmatmul.mubr.bf16.vlgmr.msra.gmra.mrb[8].mxu0 %v4574_v42 }
 0x1be   :  { %2098 = vmatmul.mubr.bf16.vlgmr.msra.gmra.mrb[8].mxu1 %v4574_v42  ;;  %2025 = vmatpush1.bf16.msra.mxu0 %v3670_v23  ;;  %v3688_v42 = vcombine.low %v388_v32, %v392_v33  ;;  %v440_v23 = vld [vmem:[#allocation7 + $0x638] sm:$0xff]  ;;  %v3734_v33 = vcombine.low %v435_v20, %v439_v21 }
 0x1bf   :  { %2056 = vmatprep.mubr.bf16.mxu0 %v4578_v49  ;;  %2107 = vmatpush1.bf16.msra.mxu1 %v3672_v27  ;;  %v3735_v27 = vcombine.high %v435_v20, %v439_v21  ;;  %v448_v32 = vld [vmem:[#allocation7 + $0x678] sm:$0xff]  ;;  %v495_v20 = vld [vmem:[#allocation7 + $0x7f0] sm:$0xff] }
 0x1c0   :  { %2138 = vmatprep.mubr.bf16.mxu1 %v4578_v49  ;;  %2026 = vmatprep.subr.bf16.mxu0 %v3679_v29  ;;  %v3694_v49 = vcombine.low %v395_v38, %v399_v39  ;;  %v3737_v29 = vcombine.high %v436_v22, %v440_v23  ;;  %v455_v38 = vld [vmem:[#allocation7 + $0x6b0] sm:$0xff]  ;;  %v452_v39 = vld [vmem:[#allocation7 + $0x698] sm:$0xff] }
 0x1c1   :  { %2108 = vmatprep.subr.bf16.mxu1 %v3681_v31  ;;  %v444_v31 = vld [vmem:[#allocation7 + $0x658] sm:$0xff] }
 0x1c2   :  { %2027 = vmatpush1.bf16.msra.mxu0 %v3678_v34  ;;  %v3736_v34 = vcombine.low %v436_v22, %v440_v23  ;;  %v492_v21 = vld [vmem:[#allocation7 + $0x7d8] sm:$0xff] }
 0x1c3   :  { %2109 = vmatpush1.bf16.msra.mxu1 %v3680_v35  ;;  %2028 = vmatprep.subr.bf16.mxu0 %v3687_v36  ;;  %v3743_v35 = vcombine.high %v443_v30, %v447_v40  ;;  %v3745_v36 = vcombine.high %v444_v31, %v448_v32  ;;  %v496_v22 = vld [vmem:[#allocation7 + $0x7f8] sm:$0xff]  ;;  %v4044_v40 = vld [vmem:[#allocation8 + $0x4] ss:$16 sps:$4 sm:$0xff]  }
 0x1c4   :  { %2110 = vmatprep.subr.bf16.mxu1 %v3689_v37  ;;  %v451_v37 = vld [vmem:[#allocation7 + $0x690] sm:$0xff]  ;;  %v3792_v30 = vcombine.low %v492_v21, %v496_v22 }
 0x1c5   :  { %v3750_v17 = vcombine.low %v451_v37, %v455_v38 }
 0x1c6   :  { %2029 = vmatpush1.bf16.msra.mxu0 %v3686_v44  ;;  %v3744_v44 = vcombine.low %v444_v31, %v448_v32  ;;  %v4047_v31 = vld [vmem:[#allocation8 + $0x204] ss:$16 sps:$4 sm:$0xff]   ;;  %v4042_v32 = vld [vmem:[#allocation8] ss:$16 sps:$4 sm:$0xff]  }
 0x1c7   :  { %2111 = vmatpush1.bf16.msra.mxu1 %v3688_v42  ;;  %2030 = vmatprep.subr.bf16.mxu0 %v3695_v45  ;;  %v3751_v42 = vcombine.high %v451_v37, %v455_v38  ;;  %v3753_v45 = vcombine.high %v452_v39, %v456_v41  ;;  %v4051_v37 = vld [vmem:[#allocation8 + $0x220] ss:$16 sps:$4 sm:$0xff]   ;;  %v4056_v38 = vld [vmem:[#allocation8 + $0x44] ss:$16 sps:$4 sm:$0xff]  }
 0x1c8   :  { %2112 = vmatprep.subr.bf16.mxu1 %v3697_v46  ;;  %v459_v46 = vld [vmem:[#allocation7 + $0x6d0] sm:$0xff] }
 0x1c9   :  { %v3758_v57 = vcombine.low %v459_v46, %v463_v47 }
 0x1ca   :  { %2031 = vmatpush1.bf16.msra.mxu0 %v3694_v49  ;;  %v3752_v49 = vcombine.low %v452_v39, %v456_v41  ;;  %v4059_v39 = vld [vmem:[#allocation8 + $0x244] ss:$16 sps:$4 sm:$0xff]   ;;  %v4054_v41 = vld [vmem:[#allocation8 + $0x40] ss:$16 sps:$4 sm:$0xff]  }
 0x1cb   :  { %2113 = vmatpush1.bf16.msra.mxu1 %v3696_v51  ;;  %2032 = vmatprep.subr.bf16.mxu0 %v3703_v52  ;;  %v3759_v51 = vcombine.high %v459_v46, %v463_v47  ;;  %v3761_v52 = vcombine.high %v460_v48, %v464_v50  ;;  %v4068_v46 = vld [vmem:[#allocation8 + $0x84] ss:$16 sps:$4 sm:$0xff]  }
 0x1cc   :  { %2114 = vmatprep.subr.bf16.mxu1 %v3705_v53  ;;  %v467_v53 = vld [vmem:[#allocation7 + $0x710] sm:$0xff] }
 0x1cd   :  { %v3766_v1 = vcombine.low %v467_v53, %v471_v54  ;;  %v4071_v47 = vld [vmem:[#allocation8 + $0x284] ss:$16 sps:$4 sm:$0xff]  }
 0x1ce   :  { %2033 = vmatpush1.bf16.msra.mxu0 %v3702_v58  ;;  %v3760_v58 = vcombine.low %v460_v48, %v464_v50  ;;  %v4066_v48 = vld [vmem:[#allocation8 + $0x80] ss:$16 sps:$4 sm:$0xff]  }
 0x1cf   :  { %2115 = vmatpush1.bf16.msra.mxu1 %v3704_v28  ;;  %2034 = vmatprep.subr.bf16.mxu0 %v3711_v59  ;;  %v3767_v28 = vcombine.high %v467_v53, %v471_v54  ;;  %v3769_v59 = vcombine.high %v468_v55, %v472_v56  ;;  %v4069_v50 = vld [vmem:[#allocation8 + $0x280] ss:$16 sps:$4 sm:$0xff]   ;;  %v4080_v53 = vld [vmem:[#allocation8 + $0xc4] ss:$16 sps:$4 sm:$0xff]  }
 0x1d0   :  { %2116 = vmatprep.subr.bf16.mxu1 %v3713_v60  ;;  %v475_v60 = vld [vmem:[#allocation7 + $0x750] sm:$0xff] }
 0x1d1   :  { %v3774_v9 = vcombine.low %v475_v60, %v479_v62  ;;  %v4083_v54 = vld [vmem:[#allocation8 + $0x2c4] ss:$16 sps:$4 sm:$0xff]  }
 0x1d2   :  { %2035 = vmatpush1.bf16.msra.mxu0 %v3710_v2  ;;  %v3768_v2 = vcombine.low %v468_v55, %v472_v56  ;;  %v4078_v55 = vld [vmem:[#allocation8 + $0xc0] ss:$16 sps:$4 sm:$0xff]  }
 0x1d3   :  { %2117 = vmatpush1.bf16.msra.mxu1 %v3712_v3  ;;  %2036 = vmatprep.subr.bf16.mxu0 %v3719_v4  ;;  %v3775_v3 = vcombine.high %v475_v60, %v479_v62  ;;  %v3777_v4 = vcombine.high %v476_v63, %v480_v0  ;;  %v4081_v56 = vld [vmem:[#allocation8 + $0x2c0] ss:$16 sps:$4 sm:$0xff]   ;;  %v4092_v60 = vld [vmem:[#allocation8 + $0x104] ss:$16 sps:$4 sm:$0xff]  }
 0x1d4   :  { %2118 = vmatprep.subr.bf16.mxu1 %v3721_v5  ;;  %v483_v5 = vld [vmem:[#allocation7 + $0x790] sm:$0xff] }
 0x1d5   :  { %v3782_v23 = vcombine.low %v483_v5, %v487_v6  ;;  %v4095_v62 = vld [vmem:[#allocation8 + $0x304] ss:$16 sps:$4 sm:$0xff]  }
 0x1d6   :  { %2037 = vmatpush1.bf16.msra.mxu0 %v3718_v10  ;;  %v3776_v10 = vcombine.low %v476_v63, %v480_v0  ;;  %v4090_v63 = vld [vmem:[#allocation8 + $0x100] ss:$16 sps:$4 sm:$0xff]  }
 0x1d7   :  { %2119 = vmatpush1.bf16.msra.mxu1 %v3720_v11  ;;  %2038 = vmatprep.subr.bf16.mxu0 %v3727_v12  ;;  %v3783_v11 = vcombine.high %v483_v5, %v487_v6  ;;  %v3785_v12 = vcombine.high %v484_v7, %v488_v8  ;;  %v4093_v0 = vld [vmem:[#allocation8 + $0x300] ss:$16 sps:$4 sm:$0xff]   ;;  %v4104_v5 = vld [vmem:[#allocation8 + $0x144] ss:$16 sps:$4 sm:$0xff]  }
 0x1d8   :  { %2120 = vmatprep.subr.bf16.mxu1 %v3729_v13  ;;  %v491_v13 = vld [vmem:[#allocation7 + $0x7d0] sm:$0xff] }
 0x1d9   :  { %v4107_v6 = vld [vmem:[#allocation8 + $0x344] ss:$16 sps:$4 sm:$0xff]  }
 0x1da   :  { %2039 = vmatpush1.bf16.msra.mxu0 %v3726_v24  ;;  %v3784_v24 = vcombine.low %v484_v7, %v488_v8  ;;  %v4102_v7 = vld [vmem:[#allocation8 + $0x140] ss:$16 sps:$4 sm:$0xff]  }
 0x1db   :  { %2121 = vmatpush1.bf16.msra.mxu1 %v3728_v25  ;;  %2040 = vmatprep.subr.bf16.mxu0 %v3735_v27  ;;  %v3791_v25 = vcombine.high %v491_v13, %v495_v20  ;;  %v3793_v27 = vcombine.high %v492_v21, %v496_v22  ;;  %v4105_v8 = vld [vmem:[#allocation8 + $0x340] ss:$16 sps:$4 sm:$0xff]  }
 0x1dc   :  { %2122 = vmatprep.subr.bf16.mxu1 %v3737_v29  ;;  %v3790_v29 = vcombine.low %v491_v13, %v495_v20  ;;  %v4116_v13 = vld [vmem:[#allocation8 + $0x184] ss:$16 sps:$4 sm:$0xff]   ;;  %v4114_v21 = vld [vmem:[#allocation8 + $0x180] ss:$16 sps:$4 sm:$0xff]  }
 0x1dd   :  { %v4119_v20 = vld [vmem:[#allocation8 + $0x384] ss:$16 sps:$4 sm:$0xff]   ;;  %v4117_v22 = vld [vmem:[#allocation8 + $0x380] ss:$16 sps:$4 sm:$0xff]  }
 0x1de   :  { %2041 = vmatpush1.bf16.msra.mxu0 %v3734_v33  ;;  %v4045_v33 = vld [vmem:[#allocation8 + $0x200] ss:$16 sps:$4 sm:$0xff]  }
 0x1df   :  { %2123 = vmatpush1.bf16.msra.mxu1 %v3736_v34  ;;  %2042 = vmatprep.subr.bf16.mxu0 %v3743_v35  ;;  %v4050_v34 = vld [vmem:[#allocation8 + $0x24] ss:$16 sps:$4 sm:$0xff]  }
 0x1e0   :  { %2124 = vmatprep.subr.bf16.mxu1 %v3745_v36  ;;  %v4053_v35 = vld [vmem:[#allocation8 + $0x224] ss:$16 sps:$4 sm:$0xff]   ;;  %v4048_v36 = vld [vmem:[#allocation8 + $0x20] ss:$16 sps:$4 sm:$0xff]  }
 0x1e2   :  { %2043 = vmatpush1.bf16.msra.mxu0 %v3742_v43  ;;  %v4057_v43 = vld [vmem:[#allocation8 + $0x240] ss:$16 sps:$4 sm:$0xff]  }
 0x1e3   :  { %2125 = vmatpush1.bf16.msra.mxu1 %v3744_v44  ;;  %2044 = vmatprep.subr.bf16.mxu0 %v3751_v42  ;;  %v4062_v44 = vld [vmem:[#allocation8 + $0x64] ss:$16 sps:$4 sm:$0xff]  }
 0x1e4   :  { %2126 = vmatprep.subr.bf16.mxu1 %v3753_v45  ;;  %v4065_v42 = vld [vmem:[#allocation8 + $0x264] ss:$16 sps:$4 sm:$0xff]   ;;  %v4060_v45 = vld [vmem:[#allocation8 + $0x60] ss:$16 sps:$4 sm:$0xff]  }
 0x1e6   :  { %2045 = vmatpush1.bf16.msra.mxu0 %v3750_v17  ;;  %v4074_v17 = vld [vmem:[#allocation8 + $0xa4] ss:$16 sps:$4 sm:$0xff]  }
 0x1e7   :  { %2127 = vmatpush1.bf16.msra.mxu1 %v3752_v49  ;;  %2046 = vmatprep.subr.bf16.mxu0 %v3759_v51  ;;  %v4077_v49 = vld [vmem:[#allocation8 + $0x2a4] ss:$16 sps:$4 sm:$0xff]   ;;  %v4072_v51 = vld [vmem:[#allocation8 + $0xa0] ss:$16 sps:$4 sm:$0xff]  }
 0x1e8   :  { %2128 = vmatprep.subr.bf16.mxu1 %v3761_v52  ;;  %v4075_v52 = vld [vmem:[#allocation8 + $0x2a0] ss:$16 sps:$4 sm:$0xff]  }
 0x1ea   :  { %2047 = vmatpush1.bf16.msra.mxu0 %v3758_v57  ;;  %v4086_v57 = vld [vmem:[#allocation8 + $0xe4] ss:$16 sps:$4 sm:$0xff]  }
 0x1eb   :  { %2129 = vmatpush1.bf16.msra.mxu1 %v3760_v58  ;;  %2048 = vmatprep.subr.bf16.mxu0 %v3767_v28  ;;  %v4089_v58 = vld [vmem:[#allocation8 + $0x2e4] ss:$16 sps:$4 sm:$0xff]   ;;  %v4084_v28 = vld [vmem:[#allocation8 + $0xe0] ss:$16 sps:$4 sm:$0xff]  }
 0x1ec   :  { %2130 = vmatprep.subr.bf16.mxu1 %v3769_v59  ;;  %v4087_v59 = vld [vmem:[#allocation8 + $0x2e0] ss:$16 sps:$4 sm:$0xff]  }
 0x1ee   :  { %2049 = vmatpush1.bf16.msra.mxu0 %v3766_v1  ;;  %v4098_v1 = vld [vmem:[#allocation8 + $0x124] ss:$16 sps:$4 sm:$0xff]  }
 0x1ef   :  { %2131 = vmatpush1.bf16.msra.mxu1 %v3768_v2  ;;  %2050 = vmatprep.subr.bf16.mxu0 %v3775_v3  ;;  %v4101_v2 = vld [vmem:[#allocation8 + $0x324] ss:$16 sps:$4 sm:$0xff]   ;;  %v4096_v3 = vld [vmem:[#allocation8 + $0x120] ss:$16 sps:$4 sm:$0xff]  }
 0x1f0   :  { %2132 = vmatprep.subr.bf16.mxu1 %v3777_v4  ;;  %v4099_v4 = vld [vmem:[#allocation8 + $0x320] ss:$16 sps:$4 sm:$0xff]  }
 0x1f2   :  { %2051 = vmatpush1.bf16.msra.mxu0 %v3774_v9  ;;  %v4110_v9 = vld [vmem:[#allocation8 + $0x164] ss:$16 sps:$4 sm:$0xff]  }
 0x1f3   :  { %2133 = vmatpush1.bf16.msra.mxu1 %v3776_v10  ;;  %2052 = vmatprep.subr.bf16.mxu0 %v3783_v11  ;;  %v4113_v10 = vld [vmem:[#allocation8 + $0x364] ss:$16 sps:$4 sm:$0xff]   ;;  %v4108_v11 = vld [vmem:[#allocation8 + $0x160] ss:$16 sps:$4 sm:$0xff]  }
 0x1f4   :  { %2134 = vmatprep.subr.bf16.mxu1 %v3785_v12  ;;  %v4111_v12 = vld [vmem:[#allocation8 + $0x360] ss:$16 sps:$4 sm:$0xff]  }
 0x1f6   :  { %2053 = vmatpush1.bf16.msra.mxu0 %v3782_v23  ;;  %v4122_v23 = vld [vmem:[#allocation8 + $0x1a4] ss:$16 sps:$4 sm:$0xff]  }
 0x1f7   :  { %2135 = vmatpush1.bf16.msra.mxu1 %v3784_v24  ;;  %2054 = vmatprep.subr.bf16.mxu0 %v3791_v25  ;;  %v4125_v24 = vld [vmem:[#allocation8 + $0x3a4] ss:$16 sps:$4 sm:$0xff]   ;;  %v4120_v25 = vld [vmem:[#allocation8 + $0x1a0] ss:$16 sps:$4 sm:$0xff]  }
 0x1f8   :  { %2136 = vmatprep.subr.bf16.mxu1 %v3793_v27  ;;  %v4123_v27 = vld [vmem:[#allocation8 + $0x3a0] ss:$16 sps:$4 sm:$0xff]  }
 0x1fa   :  { %2055 = vmatpush1.bf16.msra.mxu0 %v3790_v29  ;;  %v4128_v29 = vld [vmem:[#allocation8 + $0x1c4] ss:$16 sps:$4 sm:$0xff]  }
 0x1fb   :  { %2137 = vmatpush1.bf16.msra.mxu1 %v3792_v30  ;;  %2953 = vmatprep.subr.bf16.mxu0 %v4044_v40  ;;  %v4131_v30 = vld [vmem:[#allocation8 + $0x3c4] ss:$16 sps:$4 sm:$0xff]   ;;  %v4126_v40 = vld [vmem:[#allocation8 + $0x1c0] ss:$16 sps:$4 sm:$0xff]  }
 0x1fc   :  { %2994 = vmatprep.subr.bf16.mxu1 %v4047_v31  ;;  %v4129_v31 = vld [vmem:[#allocation8 + $0x3c0] ss:$16 sps:$4 sm:$0xff]  }
 0x1fd   :  { %2057 = vmatmul.mubr.bf16.vlgmr.msra.gmra.mrb[8].mxu0 %v4590_v61 }
 0x1fe   :  { %2139 = vmatmul.mubr.bf16.vlgmr.msra.gmra.mrb[8].mxu1 %v4590_v61  ;;  %2954 = vmatpush1.bf16.msra.mxu0 %v4042_v32  ;;  %v4063_v61 = vld [vmem:[#allocation8 + $0x260] ss:$16 sps:$4 sm:$0xff]   ;;  %v4134_v32 = vld [vmem:[#allocation8 + $0x1e4] ss:$16 sps:$4 sm:$0xff]  }
 0x1ff   :  { %2995 = vmatpush1.bf16.msra.mxu1 %v4045_v33  ;;  %2955 = vmatprep.subr.bf16.mxu0 %v4050_v34  ;;  %v4137_v33 = vld [vmem:[#allocation8 + $0x3e4] ss:$16 sps:$4 sm:$0xff]   ;;  %v4132_v34 = vld [vmem:[#allocation8 + $0x1e0] ss:$16 sps:$4 sm:$0xff]  }
 0x200   :  { %2996 = vmatprep.subr.bf16.mxu1 %v4053_v35  ;;  %v4135_v35 = vld [vmem:[#allocation8 + $0x3e0] ss:$16 sps:$4 sm:$0xff]  }
 0x202   :  { %2956 = vmatpush1.bf16.msra.mxu0 %v4048_v36  ;;  %v4140_v36 = vld [vmem:[#allocation8 + $0xc] ss:$16 sps:$4 sm:$0xff]  }
 0x203   :  { %2997 = vmatpush1.bf16.msra.mxu1 %v4051_v37  ;;  %2957 = vmatprep.subr.bf16.mxu0 %v4056_v38  ;;  %v4143_v37 = vld [vmem:[#allocation8 + $0x20c] ss:$16 sps:$4 sm:$0xff]   ;;  %v4605_v38 = vld [vmem:[%s4666_s4] sm:$0xff] }
 0x204   :  { %2998 = vmatprep.subr.bf16.mxu1 %v4059_v39  ;;  %v502_v39 = vrot.slane %v4605_v38, %v4551_v16 }
 0x206   :  { %2958 = vmatpush1.bf16.msra.mxu0 %v4054_v41  ;;  %v510_v41 = vrot.slane %v4605_v38, %v4585_v26 }
 0x207   :  { %2999 = vmatpush1.bf16.msra.mxu1 %v4057_v43  ;;  %2959 = vmatprep.subr.bf16.mxu0 %v4062_v44  ;;  %v506_v43 = vrot.slane %v4605_v38, %v4559_v18  ;;  %v514_v44 = vrot.slane %v4605_v38, %v4562_v19 }
 0x208   :  { %3000 = vmatprep.subr.bf16.mxu1 %v4065_v42 }
 0x20a   :  { %2960 = vmatpush1.bf16.msra.mxu0 %v4060_v45 }
 0x20b   :  { %3001 = vmatpush1.bf16.msra.mxu1 %v4063_v61  ;;  %2961 = vmatprep.subr.bf16.mxu0 %v4068_v46 }
 0x20c   :  { %3002 = vmatprep.subr.bf16.mxu1 %v4071_v47 }
 0x20e   :  { %2962 = vmatpush1.bf16.msra.mxu0 %v4066_v48 }
 0x20f   :  { %3003 = vmatpush1.bf16.msra.mxu1 %v4069_v50  ;;  %2963 = vmatprep.subr.bf16.mxu0 %v4074_v17 }
 0x210   :  { %3004 = vmatprep.subr.bf16.mxu1 %v4077_v49 }
 0x212   :  { %2964 = vmatpush1.bf16.msra.mxu0 %v4072_v51 }
 0x213   :  { %3005 = vmatpush1.bf16.msra.mxu1 %v4075_v52  ;;  %2965 = vmatprep.subr.bf16.mxu0 %v4080_v53 }
 0x214   :  { %3006 = vmatprep.subr.bf16.mxu1 %v4083_v54 }
 0x216   :  { %2966 = vmatpush1.bf16.msra.mxu0 %v4078_v55 }
 0x217   :  { %3007 = vmatpush1.bf16.msra.mxu1 %v4081_v56  ;;  %2967 = vmatprep.subr.bf16.mxu0 %v4086_v57 }
 0x218   :  { %3008 = vmatprep.subr.bf16.mxu1 %v4089_v58 }
 0x21a   :  { %2968 = vmatpush1.bf16.msra.mxu0 %v4084_v28 }
 0x21b   :  { %3009 = vmatpush1.bf16.msra.mxu1 %v4087_v59  ;;  %2969 = vmatprep.subr.bf16.mxu0 %v4092_v60  ;;  %v4138_v59 = vld [vmem:[#allocation8 + $0x8] ss:$16 sps:$4 sm:$0xff]  }
 0x21c   :  { %3010 = vmatprep.subr.bf16.mxu1 %v4095_v62  ;;  %v4141_v60 = vld [vmem:[#allocation8 + $0x208] ss:$16 sps:$4 sm:$0xff]  }
 0x21e   :  { %2970 = vmatpush1.bf16.msra.mxu0 %v4090_v63 }
 0x21f   :  { %3011 = vmatpush1.bf16.msra.mxu1 %v4093_v0  ;;  %2971 = vmatprep.subr.bf16.mxu0 %v4098_v1  ;;  %v4146_v0 = vld [vmem:[#allocation8 + $0x2c] ss:$16 sps:$4 sm:$0xff]  }
 0x220   :  { %3012 = vmatprep.subr.bf16.mxu1 %v4101_v2  ;;  %v4149_v1 = vld [vmem:[#allocation8 + $0x22c] ss:$16 sps:$4 sm:$0xff]   ;;  %v4144_v2 = vld [vmem:[#allocation8 + $0x28] ss:$16 sps:$4 sm:$0xff]  }
 0x222   :  { %2972 = vmatpush1.bf16.msra.mxu0 %v4096_v3  ;;  %v4147_v3 = vld [vmem:[#allocation8 + $0x228] ss:$16 sps:$4 sm:$0xff]  }
 0x223   :  { %3013 = vmatpush1.bf16.msra.mxu1 %v4099_v4  ;;  %2973 = vmatprep.subr.bf16.mxu0 %v4104_v5  ;;  %v4152_v4 = vld [vmem:[#allocation8 + $0x4c] ss:$16 sps:$4 sm:$0xff]  }
 0x224   :  { %3014 = vmatprep.subr.bf16.mxu1 %v4107_v6  ;;  %v4155_v5 = vld [vmem:[#allocation8 + $0x24c] ss:$16 sps:$4 sm:$0xff]   ;;  %v4150_v6 = vld [vmem:[#allocation8 + $0x48] ss:$16 sps:$4 sm:$0xff]  }
 0x226   :  { %2974 = vmatpush1.bf16.msra.mxu0 %v4102_v7  ;;  %v4153_v7 = vld [vmem:[#allocation8 + $0x248] ss:$16 sps:$4 sm:$0xff]  }
 0x227   :  { %3015 = vmatpush1.bf16.msra.mxu1 %v4105_v8  ;;  %2975 = vmatprep.subr.bf16.mxu0 %v4110_v9  ;;  %v4158_v8 = vld [vmem:[#allocation8 + $0x6c] ss:$16 sps:$4 sm:$0xff]  }
 0x228   :  { %3016 = vmatprep.subr.bf16.mxu1 %v4113_v10  ;;  %v4161_v9 = vld [vmem:[#allocation8 + $0x26c] ss:$16 sps:$4 sm:$0xff]   ;;  %v4156_v10 = vld [vmem:[#allocation8 + $0x68] ss:$16 sps:$4 sm:$0xff]  }
 0x22a   :  { %2976 = vmatpush1.bf16.msra.mxu0 %v4108_v11  ;;  %v4159_v11 = vld [vmem:[#allocation8 + $0x268] ss:$16 sps:$4 sm:$0xff]  }
 0x22b   :  { %3017 = vmatpush1.bf16.msra.mxu1 %v4111_v12  ;;  %2977 = vmatprep.subr.bf16.mxu0 %v4116_v13  ;;  %v4164_v12 = vld [vmem:[#allocation8 + $0x8c] ss:$16 sps:$4 sm:$0xff]  }
 0x22c   :  { %3018 = vmatprep.subr.bf16.mxu1 %v4119_v20  ;;  %v4167_v13 = vld [vmem:[#allocation8 + $0x28c] ss:$16 sps:$4 sm:$0xff]   ;;  %v4162_v20 = vld [vmem:[#allocation8 + $0x88] ss:$16 sps:$4 sm:$0xff]  }
 0x22e   :  { %2978 = vmatpush1.bf16.msra.mxu0 %v4114_v21  ;;  %v4165_v21 = vld [vmem:[#allocation8 + $0x288] ss:$16 sps:$4 sm:$0xff]  }
 0x22f   :  { %3019 = vmatpush1.bf16.msra.mxu1 %v4117_v22  ;;  %2979 = vmatprep.subr.bf16.mxu0 %v4122_v23  ;;  %v4170_v22 = vld [vmem:[#allocation8 + $0xac] ss:$16 sps:$4 sm:$0xff]  }
 0x230   :  { %3020 = vmatprep.subr.bf16.mxu1 %v4125_v24  ;;  %v4173_v23 = vld [vmem:[#allocation8 + $0x2ac] ss:$16 sps:$4 sm:$0xff]   ;;  %v4168_v24 = vld [vmem:[#allocation8 + $0xa8] ss:$16 sps:$4 sm:$0xff]  }
 0x232   :  { %2980 = vmatpush1.bf16.msra.mxu0 %v4120_v25  ;;  %v4171_v25 = vld [vmem:[#allocation8 + $0x2a8] ss:$16 sps:$4 sm:$0xff]  }
 0x233   :  { %3021 = vmatpush1.bf16.msra.mxu1 %v4123_v27  ;;  %2981 = vmatprep.subr.bf16.mxu0 %v4128_v29  ;;  %v4176_v27 = vld [vmem:[#allocation8 + $0xcc] ss:$16 sps:$4 sm:$0xff]  }
 0x234   :  { %3022 = vmatprep.subr.bf16.mxu1 %v4131_v30  ;;  %v4179_v29 = vld [vmem:[#allocation8 + $0x2cc] ss:$16 sps:$4 sm:$0xff]   ;;  %v4174_v30 = vld [vmem:[#allocation8 + $0xc8] ss:$16 sps:$4 sm:$0xff]  }
 0x236   :  { %2982 = vmatpush1.bf16.msra.mxu0 %v4126_v40  ;;  %v4177_v40 = vld [vmem:[#allocation8 + $0x2c8] ss:$16 sps:$4 sm:$0xff]  }
 0x237   :  { %3023 = vmatpush1.bf16.msra.mxu1 %v4129_v31  ;;  %2983 = vmatprep.subr.bf16.mxu0 %v4134_v32  ;;  %v4182_v31 = vld [vmem:[#allocation8 + $0xec] ss:$16 sps:$4 sm:$0xff]  }
 0x238   :  { %3024 = vmatprep.subr.bf16.mxu1 %v4137_v33  ;;  %v4185_v32 = vld [vmem:[#allocation8 + $0x2ec] ss:$16 sps:$4 sm:$0xff]   ;;  %v4180_v33 = vld [vmem:[#allocation8 + $0xe8] ss:$16 sps:$4 sm:$0xff]  }
 0x23a   :  { %2984 = vmatpush1.bf16.msra.mxu0 %v4132_v34  ;;  %v4183_v34 = vld [vmem:[#allocation8 + $0x2e8] ss:$16 sps:$4 sm:$0xff]  }
 0x23b   :  { %3025 = vmatpush1.bf16.msra.mxu1 %v4135_v35  ;;  %3035 = vmatprep.subr.bf16.mxu0 %v4140_v36  ;;  %v4188_v35 = vld [vmem:[#allocation8 + $0x10c] ss:$16 sps:$4 sm:$0xff]  }
 0x23c   :  { %3076 = vmatprep.subr.bf16.mxu1 %v4143_v37  ;;  %v4191_v36 = vld [vmem:[#allocation8 + $0x30c] ss:$16 sps:$4 sm:$0xff]   ;;  %v4186_v37 = vld [vmem:[#allocation8 + $0x108] ss:$16 sps:$4 sm:$0xff]  }
 0x250   :  { %v1894_v42 = vpop.f32.mrb[4].mxu0  ;;  %v1976_v45 = vpop.f32.mrb[4].mxu1 }
 0x251   :  { %v3999_v61 = vadd.f32 %v1894_v42, %v502_v39  ;;  %v4001_v46 = vadd.f32 %v1976_v45, %v510_v41  ;;  %v1896_v47 = vpop.f32.mrb[5].mxu0  ;;  %v1978_v48 = vpop.f32.mrb[5].mxu1  ;;  %v4189_v39 = vld [vmem:[#allocation8 + $0x308] ss:$16 sps:$4 sm:$0xff]   ;;  %v4194_v41 = vld [vmem:[#allocation8 + $0x12c] ss:$16 sps:$4 sm:$0xff]  }
 0x252   :  { %v4000_v50 = vadd.f32 %v1896_v47, %v506_v43  ;;  %v4002_v17 = vadd.f32 %v1978_v48, %v514_v44  ;;  %v1898_v49 = vpop.f32.mrb[6].mxu0  ;;  %v1980_v51 = vpop.f32.mrb[6].mxu1  ;;  %v4197_v43 = vld [vmem:[#allocation8 + $0x32c] ss:$16 sps:$4 sm:$0xff]   ;;  %v4192_v44 = vld [vmem:[#allocation8 + $0x128] ss:$16 sps:$4 sm:$0xff]  }
 0x253   :  { %v2147_v52 = vmax.f32 %v3999_v61, 0.0  ;;  %v2149_v53 = vmax.f32 %v4001_v46, 0.0  ;;  %v1899_v54 = vpop.f32.mrb[7].mxu0  ;;  %v1981_v55 = vpop.f32.mrb[7].mxu1  ;;  %v4195_v42 = vld [vmem:[#allocation8 + $0x328] ss:$16 sps:$4 sm:$0xff]  }
 0x254   :  { %v2148_v56 = vmax.f32 %v4000_v50, 0.0  ;;  %v2150_v57 = vmax.f32 %v4002_v17, 0.0  ;;  %v4200_v45 = vld [vmem:[#allocation8 + $0x14c] ss:$16 sps:$4 sm:$0xff]   ;;  %v4198_v46 = vld [vmem:[#allocation8 + $0x148] ss:$16 sps:$4 sm:$0xff]  }
 0x255   :  { %v4615_v62 = vpack.c.bf16 %v2147_v52, %v2147_v52  ;;  %v4617_v63 = vpack.c.bf16 %v2149_v53, %v2149_v53  ;;  %v4203_v61 = vld [vmem:[#allocation8 + $0x34c] ss:$16 sps:$4 sm:$0xff]   ;;  %v4201_v47 = vld [vmem:[#allocation8 + $0x348] ss:$16 sps:$4 sm:$0xff]  }
 0x256   :  { %v2156_v58 = vpack.c.bf16 %v2148_v56, %v2148_v56  ;;  %v2158_v28 = vpack.c.bf16 %v2150_v57, %v2150_v57  ;;  %v4206_v48 = vld [vmem:[#allocation8 + $0x16c] ss:$16 sps:$4 sm:$0xff]   ;;  %v4204_v17 = vld [vmem:[#allocation8 + $0x168] ss:$16 sps:$4 sm:$0xff]  }
 0x257   :  { %v4209_v50 = vld [vmem:[#allocation8 + $0x36c] ss:$16 sps:$4 sm:$0xff]   ;;  %v4207_v49 = vld [vmem:[#allocation8 + $0x368] ss:$16 sps:$4 sm:$0xff]  }
 0x258   :  { %2985 = vmatprep.mubr.bf16.mxu0 %v2156_v58  ;;  %3026 = vmatprep.mubr.bf16.mxu1 %v2158_v28  ;;  %v4212_v51 = vld [vmem:[#allocation8 + $0x18c] ss:$16 sps:$4 sm:$0xff]   ;;  %v4210_v53 = vld [vmem:[#allocation8 + $0x188] ss:$16 sps:$4 sm:$0xff]  }
 0x259   :  { %2986 = vmatmul.mubr.bf16.vlgmr.msra.gmra.mrb[12].mxu0 %v4615_v62  ;;  %3027 = vmatmul.mubr.bf16.vlgmr.msra.gmra.mrb[12].mxu1 %v4617_v63  ;;  %v4215_v52 = vld [vmem:[#allocation8 + $0x38c] ss:$16 sps:$4 sm:$0xff]   ;;  %v4213_v54 = vld [vmem:[#allocation8 + $0x388] ss:$16 sps:$4 sm:$0xff]  }
 0x25a   :  { %3036 = vmatpush1.bf16.msra.mxu0 %v4138_v59  ;;  %3077 = vmatpush1.bf16.msra.mxu1 %v4141_v60  ;;  %v4218_v55 = vld [vmem:[#allocation8 + $0x1ac] ss:$16 sps:$4 sm:$0xff]   ;;  %v4216_v57 = vld [vmem:[#allocation8 + $0x1a8] ss:$16 sps:$4 sm:$0xff]  }
 0x25b   :  { %3067 = vmatprep.mubr.bf16.mxu0 %v2156_v58  ;;  %3108 = vmatprep.mubr.bf16.mxu1 %v2158_v28  ;;  %v4221_v56 = vld [vmem:[#allocation8 + $0x3ac] ss:$16 sps:$4 sm:$0xff]   ;;  %v4219_v58 = vld [vmem:[#allocation8 + $0x3a8] ss:$16 sps:$4 sm:$0xff]  }
 0x25c   :  { %3037 = vmatprep.subr.bf16.mxu0 %v4146_v0  ;;  %3078 = vmatprep.subr.bf16.mxu1 %v4149_v1  ;;  %v4224_v28 = vld [vmem:[#allocation8 + $0x1cc] ss:$16 sps:$4 sm:$0xff]   ;;  %v4222_v60 = vld [vmem:[#allocation8 + $0x1c8] ss:$16 sps:$4 sm:$0xff]  }
 0x25d   :  { %v4227_v59 = vld [vmem:[#allocation8 + $0x3cc] ss:$16 sps:$4 sm:$0xff]   ;;  %v4225_v0 = vld [vmem:[#allocation8 + $0x3c8] ss:$16 sps:$4 sm:$0xff]  }
 0x25e   :  { %3038 = vmatpush1.bf16.msra.mxu0 %v4144_v2  ;;  %3079 = vmatpush1.bf16.msra.mxu1 %v4147_v3  ;;  %v4230_v1 = vld [vmem:[#allocation8 + $0x1ec] ss:$16 sps:$4 sm:$0xff]   ;;  %v4228_v3 = vld [vmem:[#allocation8 + $0x1e8] ss:$16 sps:$4 sm:$0xff]  }
 0x25f   :  { %3039 = vmatprep.subr.bf16.mxu0 %v4152_v4  ;;  %3080 = vmatprep.subr.bf16.mxu1 %v4155_v5  ;;  %v4233_v2 = vld [vmem:[#allocation8 + $0x3ec] ss:$16 sps:$4 sm:$0xff]   ;;  %v4231_v4 = vld [vmem:[#allocation8 + $0x3e8] ss:$16 sps:$4 sm:$0xff]   ;;  %v4234_v5 = vld [vmem:[#allocation10 + $0x40] sm:$0xff]  }
 0x262   :  { %3040 = vmatpush1.bf16.msra.mxu0 %v4150_v6  ;;  %3081 = vmatpush1.bf16.msra.mxu1 %v4153_v7  ;;  %v4235_v6 = vld [vmem:[#allocation10 + $0xc0] sm:$0xff]  }
 0x263   :  { %3041 = vmatprep.subr.bf16.mxu0 %v4158_v8  ;;  %3082 = vmatprep.subr.bf16.mxu1 %v4161_v9  ;;  %v4236_v7 = vld [vmem:[#allocation10] sm:$0xff]   ;;  %v4238_v9 = vld [vmem:[#allocation10 + $0x48] sm:$0xff]  }
 0x264   :  { %v4237_v8 = vld [vmem:[#allocation10 + $0x80] sm:$0xff]  }
 0x266   :  { %3042 = vmatpush1.bf16.msra.mxu0 %v4156_v10  ;;  %3083 = vmatpush1.bf16.msra.mxu1 %v4159_v11  ;;  %v4239_v10 = vld [vmem:[#allocation10 + $0xc8] sm:$0xff]  }
 0x267   :  { %3043 = vmatprep.subr.bf16.mxu0 %v4164_v12  ;;  %3084 = vmatprep.subr.bf16.mxu1 %v4167_v13  ;;  %v4240_v11 = vld [vmem:[#allocation10 + $0x8] sm:$0xff]   ;;  %v4242_v13 = vld [vmem:[#allocation10 + $0x50] sm:$0xff]  }
 0x268   :  { %v4241_v12 = vld [vmem:[#allocation10 + $0x88] sm:$0xff]  }
 0x26a   :  { %3044 = vmatpush1.bf16.msra.mxu0 %v4162_v20  ;;  %3085 = vmatpush1.bf16.msra.mxu1 %v4165_v21  ;;  %v4243_v20 = vld [vmem:[#allocation10 + $0xd0] sm:$0xff]  }
 0x26b   :  { %3045 = vmatprep.subr.bf16.mxu0 %v4170_v22  ;;  %3086 = vmatprep.subr.bf16.mxu1 %v4173_v23  ;;  %v4244_v21 = vld [vmem:[#allocation10 + $0x10] sm:$0xff]   ;;  %v4246_v23 = vld [vmem:[#allocation10 + $0x58] sm:$0xff]  }
 0x26c   :  { %v4245_v22 = vld [vmem:[#allocation10 + $0x90] sm:$0xff]  }
 0x26e   :  { %3046 = vmatpush1.bf16.msra.mxu0 %v4168_v24  ;;  %3087 = vmatpush1.bf16.msra.mxu1 %v4171_v25  ;;  %v4247_v24 = vld [vmem:[#allocation10 + $0xd8] sm:$0xff]   ;;  %v4250_v25 = vld [vmem:[#allocation10 + $0x60] sm:$0xff]  }
 0x26f   :  { %3047 = vmatprep.subr.bf16.mxu0 %v4176_v27  ;;  %3088 = vmatprep.subr.bf16.mxu1 %v4179_v29  ;;  %v4251_v27 = vld [vmem:[#allocation10 + $0xe0] sm:$0xff]  }
 0x270   :  { %v4252_v29 = vld [vmem:[#allocation10 + $0x20] sm:$0xff]  }
 0x272   :  { %3048 = vmatpush1.bf16.msra.mxu0 %v4174_v30  ;;  %3089 = vmatpush1.bf16.msra.mxu1 %v4177_v40  ;;  %v4253_v30 = vld [vmem:[#allocation10 + $0xa0] sm:$0xff]   ;;  %v4254_v40 = vld [vmem:[#allocation10 + $0x68] sm:$0xff]  }
 0x273   :  { %3049 = vmatprep.subr.bf16.mxu0 %v4182_v31  ;;  %3090 = vmatprep.subr.bf16.mxu1 %v4185_v32  ;;  %v4255_v31 = vld [vmem:[#allocation10 + $0xe8] sm:$0xff]  }
 0x274   :  { %v4256_v32 = vld [vmem:[#allocation10 + $0x28] sm:$0xff]  }
 0x276   :  { %3050 = vmatpush1.bf16.msra.mxu0 %v4180_v33  ;;  %3091 = vmatpush1.bf16.msra.mxu1 %v4183_v34  ;;  %v4257_v33 = vld [vmem:[#allocation10 + $0xa8] sm:$0xff]   ;;  %v4258_v34 = vld [vmem:[#allocation10 + $0x70] sm:$0xff]  }
 0x277   :  { %3051 = vmatprep.subr.bf16.mxu0 %v4188_v35  ;;  %3092 = vmatprep.subr.bf16.mxu1 %v4191_v36  ;;  %v4259_v35 = vld [vmem:[#allocation10 + $0xf0] sm:$0xff]  }
 0x278   :  { %v4260_v36 = vld [vmem:[#allocation10 + $0x30] sm:$0xff]  }
 0x27a   :  { %3052 = vmatpush1.bf16.msra.mxu0 %v4186_v37  ;;  %3093 = vmatpush1.bf16.msra.mxu1 %v4189_v39  ;;  %v4261_v37 = vld [vmem:[#allocation10 + $0xb0] sm:$0xff]   ;;  %v4262_v39 = vld [vmem:[#allocation10 + $0x78] sm:$0xff]  }
 0x27b   :  { %3053 = vmatprep.subr.bf16.mxu0 %v4194_v41  ;;  %3094 = vmatprep.subr.bf16.mxu1 %v4197_v43  ;;  %v4263_v41 = vld [vmem:[#allocation10 + $0xf8] sm:$0xff]  }
 0x27c   :  { %v4264_v43 = vld [vmem:[#allocation10 + $0x38] sm:$0xff]  }
 0x27e   :  { %3054 = vmatpush1.bf16.msra.mxu0 %v4192_v44  ;;  %3095 = vmatpush1.bf16.msra.mxu1 %v4195_v42  ;;  %v4265_v44 = vld [vmem:[#allocation10 + $0xb8] sm:$0xff]   ;;  %v517_v42 = vsub.s32 4, %v4548_v15 }
 0x27f   :  { %3055 = vmatprep.subr.bf16.mxu0 %v4200_v45  ;;  %3096 = vmatprep.subr.bf16.mxu1 %v4203_v61  ;;  %v525_v45 = vsub.s32 6, %v4548_v15  ;;  %v521_v61 = vsub.s32 5, %v4548_v15 }
 0x282   :  { %3056 = vmatpush1.bf16.msra.mxu0 %v4198_v46  ;;  %3097 = vmatpush1.bf16.msra.mxu1 %v4201_v47  ;;  %v529_v46 = vsub.s32 7, %v4548_v15  ;;  %v518_v47 = vrot.slane %v4605_v38, %v517_v42 }
 0x283   :  { %3057 = vmatprep.subr.bf16.mxu0 %v4206_v48  ;;  %3098 = vmatprep.subr.bf16.mxu1 %v4209_v50  ;;  %v526_v48 = vrot.slane %v4605_v38, %v525_v45  ;;  %v522_v50 = vrot.slane %v4605_v38, %v521_v61 }
 0x286   :  { %3058 = vmatpush1.bf16.msra.mxu0 %v4204_v17  ;;  %3099 = vmatpush1.bf16.msra.mxu1 %v4207_v49  ;;  %v530_v17 = vrot.slane %v4605_v38, %v529_v46 }
 0x287   :  { %3059 = vmatprep.subr.bf16.mxu0 %v4212_v51  ;;  %3100 = vmatprep.subr.bf16.mxu1 %v4215_v52 }
 0x28a   :  { %3060 = vmatpush1.bf16.msra.mxu0 %v4210_v53  ;;  %3101 = vmatpush1.bf16.msra.mxu1 %v4213_v54 }
 0x28b   :  { %3061 = vmatprep.subr.bf16.mxu0 %v4218_v55  ;;  %3102 = vmatprep.subr.bf16.mxu1 %v4221_v56 }
 0x28e   :  { %3062 = vmatpush1.bf16.msra.mxu0 %v4216_v57  ;;  %3103 = vmatpush1.bf16.msra.mxu1 %v4219_v58 }
 0x28f   :  { %3063 = vmatprep.subr.bf16.mxu0 %v4224_v28  ;;  %3104 = vmatprep.subr.bf16.mxu1 %v4227_v59 }
 0x292   :  { %3064 = vmatpush1.bf16.msra.mxu0 %v4222_v60  ;;  %3105 = vmatpush1.bf16.msra.mxu1 %v4225_v0 }
 0x293   :  { %3065 = vmatprep.subr.bf16.mxu0 %v4230_v1  ;;  %3106 = vmatprep.subr.bf16.mxu1 %v4233_v2 }
 0x296   :  { %3066 = vmatpush1.bf16.msra.mxu0 %v4228_v3  ;;  %3107 = vmatpush1.bf16.msra.mxu1 %v4231_v4 }
 0x297   :  { %3955 = vmatprep.subr.bf16.mxu0 %v4234_v5  ;;  %3977 = vmatprep.subr.bf16.mxu1 %v4235_v6  ;;  %v2291_v6 = vld [vmem:[%s4668_s6] sm:$0xf] }
 0x299   :  { %3068 = vmatmul.mubr.bf16.vlgmr.msra.gmra.mrb[16].mxu0 %v4615_v62  ;;  %3109 = vmatmul.mubr.bf16.vlgmr.msra.gmra.mrb[16].mxu1 %v4617_v63  ;;  %v4248_v62 = vld [vmem:[#allocation10 + $0x18] sm:$0xff]  }
 0x29a   :  { %3956 = vmatpush3.bf16.msra.mxu0 %v4236_v7  ;;  %3978 = vmatpush3.bf16.msra.mxu1 %v4237_v8  ;;  %v4249_v63 = vld [vmem:[#allocation10 + $0x98] sm:$0xff]   ;;  %v2296_v7 = vrot.slane %v2291_v6, %v4551_v16  ;;  %v2300_v8 = vrot.slane %v2291_v6, %v4559_v18 }
 0x29b   :  { %3957 = vmatprep.subr.bf16.mxu0 %v4238_v9  ;;  %3979 = vmatprep.subr.bf16.mxu1 %v4239_v10 }
 0x29e   :  { %3958 = vmatpush3.bf16.msra.mxu0 %v4240_v11  ;;  %3980 = vmatpush3.bf16.msra.mxu1 %v4241_v12 }
 0x29f   :  { %3959 = vmatprep.subr.bf16.mxu0 %v4242_v13  ;;  %3981 = vmatprep.subr.bf16.mxu1 %v4243_v20 }
 0x2a2   :  { %3960 = vmatpush3.bf16.msra.mxu0 %v4244_v21  ;;  %3982 = vmatpush3.bf16.msra.mxu1 %v4245_v22 }
 0x2a3   :  { %3961 = vmatprep.subr.bf16.mxu0 %v4246_v23  ;;  %3983 = vmatprep.subr.bf16.mxu1 %v4247_v24 }
 0x2a6   :  { %3962 = vmatpush3.bf16.msra.mxu0 %v4248_v62  ;;  %3984 = vmatpush3.bf16.msra.mxu1 %v4249_v63 }
 0x2a7   :  { %3963 = vmatprep.subr.bf16.mxu0 %v4250_v25  ;;  %3985 = vmatprep.subr.bf16.mxu1 %v4251_v27  ;;  %v2304_v25 = vrot.slane %v2291_v6, %v4585_v26  ;;  %v2308_v27 = vrot.slane %v2291_v6, %v4562_v19  ;;  %v3922_v26 = vld [vmem:[%s4670_s8] ss:$0 sm:$0xff]  ;;  %s4434_s8 = smov [#allocation11]  }
 0x2a8   :  { %s3521_s12 = sshll.u32 %s4434_s8, 4  ;;  %s3522_s12 = int_to_ptr.vmem [resolvable:$true] %s3521_s12 }
 0x2a9   :  { %s4392_s13 = scalar_lea.vmem %s3522_s12, 512  ;;  %p4397_p13 = scmp.lt.s32.totalorder %s3522_s12, %s3522_s12 }
 0x2aa   :  { %3964 = vmatpush3.bf16.msra.mxu0 %v4252_v29  ;;  %3986 = vmatpush3.bf16.msra.mxu1 %v4253_v30  ;;  %p4393_p12 = scmp.ne.s32.totalorder %s3522_s12, %s4392_s13  ;;  %p4398_p0 = scmp.lt.s32.totalorder %s4392_s13, %s4392_s13 }
 0x2ab   :  { %3965 = vmatprep.subr.bf16.mxu0 %v4254_v40  ;;  %3987 = vmatprep.subr.bf16.mxu1 %v4255_v31 }
 0x2ac   :  { %p4399_p1 = por %p4398_p0, %p4397_p13 }
 0x2ae   :  { %3966 = vmatpush3.bf16.msra.mxu0 %v4256_v32  ;;  %3988 = vmatpush3.bf16.msra.mxu1 %v4257_v33  ;;  %p4400_p2 = pnand %p4399_p1, %p4393_p12 }
 0x2af   :  { %3967 = vmatprep.subr.bf16.mxu0 %v4258_v34  ;;  %3989 = vmatprep.subr.bf16.mxu1 %v4259_v35 }
 0x2b2   :  { %3968 = vmatpush3.bf16.msra.mxu0 %v4260_v36  ;;  %3990 = vmatpush3.bf16.msra.mxu1 %v4261_v37 }
 0x2b3   :  { %3969 = vmatprep.subr.bf16.mxu0 %v4262_v39  ;;  %3991 = vmatprep.subr.bf16.mxu1 %v4263_v41 }
 0x2b6   :  { %3970 = vmatpush3.bf16.msra.mxu0 %v4264_v43  ;;  %3992 = vmatpush3.bf16.msra.mxu1 %v4265_v44 }
 0x2d0   :  { %v2058_v49 = vpop.f32.mrb[8].mxu0 }
 0x2d1   :  { %v4003_v51 = vadd.f32 %v2058_v49, %v518_v47  ;;  %v2140_v52 = vpop.f32.mrb[8].mxu1  ;;  %v2060_v53 = vpop.f32.mrb[9].mxu0  ;;  %v3461_v47 = vand.u32 127, %v107_v14 }
 0x2d2   :  { %v4005_v54 = vadd.f32 %v2140_v52, %v526_v48  ;;  %v4004_v55 = vadd.f32 %v2060_v53, %v522_v50  ;;  %v2142_v56 = vpop.f32.mrb[9].mxu1  ;;  %v2062_v57 = vpop.f32.mrb[10].mxu0 }
 0x2d3   :  { %v2151_v58 = vmax.f32 %v4003_v51, 0.0  ;;  %v4006_v28 = vadd.f32 %v2142_v56, %v530_v17  ;;  %v2144_v59 = vpop.f32.mrb[10].mxu1  ;;  %v2063_v15 = vpop.f32.mrb[11].mxu0  ;;  %vm3462_vm1 = vcmp.lt.s32.totalorder %v3461_v47, 51 }
 0x2d4   :  { %v2153_v60 = vmax.f32 %v4005_v54, 0.0  ;;  %v2152_v0 = vmax.f32 %v4004_v55, 0.0  ;;  %v2145_v1 = vpop.f32.mrb[11].mxu1 }
 0x2d5   :  { %v2154_v2 = vmax.f32 %v4006_v28, 0.0  ;;  %v2159_v4 = vpack.c.bf16 %v2151_v58, %v2151_v58 }
 0x2d6   :  { %v2160_v3 = vpack.c.bf16 %v2152_v0, %v2152_v0  ;;  %v2161_v38 = vpack.c.bf16 %v2153_v60, %v2153_v60 }
 0x2d7   :  { %v2162_v5 = vpack.c.bf16 %v2154_v2, %v2154_v2 }
 0x2d8   :  { %3412 = vmatprep.mubr.bf16.mxu0 %v2160_v3 }
 0x2d9   :  { %3452 = vmatprep.mubr.bf16.mxu1 %v2162_v5  ;;  %3413 = vmatmul.mubr.bf16.vlgmr.msra.gmra.mrb[20].mxu0 %v2159_v4 }
 0x2da   :  { %3453 = vmatmul.mubr.bf16.vlgmr.msra.gmra.mrb[20].mxu1 %v2161_v38 }
 0x32c   :  { %v2987_v9 = vpop.f32.mrb[12].mxu0  ;;  %v3028_v10 = vpop.f32.mrb[12].mxu1 }
 0x32d   :  { %v2988_v11 = vadd.f32 %v2987_v9, %v2296_v7  ;;  %v2989_v12 = vpop.f32.mrb[13].mxu0  ;;  %v3030_v13 = vpop.f32.mrb[13].mxu1 }
 0x32e   :  { %v2990_v20 = vadd.f32 %v2989_v12, %v2300_v8  ;;  %v2991_v21 = vpop.f32.mrb[14].mxu0  ;;  %v3032_v22 = vpop.f32.mrb[14].mxu1 }
 0x32f   :  { %v3029_v23 = vadd.f32 %v3028_v10, %v2988_v11  ;;  %v2992_v24 = vpop.f32.mrb[15].mxu0  ;;  %v3033_v62 = vpop.f32.mrb[15].mxu1 }
 0x330   :  { %v3031_v63 = vadd.f32 %v3030_v13, %v2990_v20 }
 0x36c   :  { %v3069_v29 = vpop.f32.mrb[16].mxu0  ;;  %v3110_v16 = vpop.f32.mrb[16].mxu1 }
 0x36d   :  { %v3070_v30 = vadd.f32 %v3069_v29, %v2304_v25  ;;  %v3071_v18 = vpop.f32.mrb[17].mxu0  ;;  %v3112_v40 = vpop.f32.mrb[17].mxu1 }
 0x36e   :  { %v3072_v31 = vadd.f32 %v3071_v18, %v2308_v27  ;;  %v3073_v32 = vpop.f32.mrb[18].mxu0  ;;  %v3114_v33 = vpop.f32.mrb[18].mxu1 }
 0x36f   :  { %v3111_v34 = vadd.f32 %v3110_v16, %v3070_v30  ;;  %v3074_v35 = vpop.f32.mrb[19].mxu0  ;;  %v3115_v36 = vpop.f32.mrb[19].mxu1 }
 0x370   :  { %v3113_v37 = vadd.f32 %v3112_v40, %v3072_v31 }
 0x3ac   :  { %v3971_v39 = vpop.f32.mrb[20].mxu0 }
 0x3ad   :  { %v3993_v41 = vpop.f32.mrb[20].mxu1  ;;  %v3972_v43 = vpop.f32.mrb[21].mxu0 }
 0x3ae   :  { %v3973_v19 = vadd.f32 %v3972_v43, %v3971_v39  ;;  %v3994_v44 = vpop.f32.mrb[21].mxu1  ;;  %v3974_v42 = vpop.f32.mrb[22].mxu0 }
 0x3af   :  { %v3995_v45 = vadd.f32 %v3994_v44, %v3993_v41  ;;  %v3996_v61 = vpop.f32.mrb[22].mxu1  ;;  %v3975_v46 = vpop.f32.mrb[23].mxu0 }
 0x3b0   :  { %v3415_v48 = vadd.f32 %v3973_v19, %v3922_v26  ;;  %v3997_v50 = vpop.f32.mrb[23].mxu1 }
 0x3b2   :  { %v3455_v17 = vadd.f32 %v3995_v45, %v3415_v48 }
 0x3b4   :  { %v3489_v49 = vadd.f32 %v3455_v17, %v3111_v34  ;;  %v3463_v51 = vadd.f32 %v3455_v17, %v3029_v23  ;;  %v3502_v52 = vadd.f32 %v3455_v17, %v3113_v37  ;;  %v3476_v53 = vadd.f32 %v3455_v17, %v3031_v63 }
 0x3b6   :  { %v3490_v54 = vsel %vm3462_vm1, %v3489_v49, -1e+30  ;;  %v3464_v55 = vsel %vm3462_vm1, %v3463_v51, -1e+30  ;;  %v3503_v56 = vsel %vm3462_vm1, %v3502_v52, -1e+30 }
 0x3b7   :  { %3491 = vmax.xlane.f32.xlu1 %v3490_v54  ;;  %3465 = vmax.xlane.f32.xlu0 %v3464_v55  ;;  %v3477_v57 = vsel %vm3462_vm1, %v3476_v53, -1e+30 }
 0x3bb   :  { %3504 = vmax.xlane.f32.xlu1 %v3503_v56  ;;  %3478 = vmax.xlane.f32.xlu0 %v3477_v57 }
 0x444   :  { %v3492_v14 = vpop.xlane.xlu1 %3491  ;;  %v3466_v58 = vpop.xlane.xlu0 %3465 }
 0x445   :  { %v3493_v28 = vsub.f32 %v3490_v54, %v3492_v14  ;;  %v3467_v59 = vsub.f32 %v3464_v55, %v3466_v58 }
 0x447   :  { %v3468_v15 = vmul.f32 1.442695, %v3467_v59  ;;  %v3494_v60 = vmul.f32 1.442695, %v3493_v28 }
 0x448   :  { %v3505_v0 = vpop.xlane.xlu1 %3504  ;;  %v3479_v1 = vpop.xlane.xlu0 %3478 }
 0x449   :  { %v3506_v2 = vsub.f32 %v3503_v56, %v3505_v0  ;;  %v3480_v3 = vsub.f32 %v3477_v57, %v3479_v1  ;;  %4266 = vpow2.f32 %v3468_v15 }
 0x44a   :  { %4268 = vpow2.f32 %v3494_v60 }
 0x44b   :  { %v3481_v4 = vmul.f32 1.442695, %v3480_v3  ;;  %v3507_v5 = vmul.f32 1.442695, %v3506_v2 }
 0x44d   :  { %4270 = vpow2.f32 %v3481_v4 }
 0x44e   :  { %4272 = vpow2.f32 %v3507_v5 }
 0x453   :  { %v4267_v38 = vpop.eup %4266 }
 0x454   :  { %v3470_v6 = vsel %vm3462_vm1, %v4267_v38, 0.0  ;;  %v4269_v7 = vpop.eup %4268 }
 0x455   :  { %3471 = vadd.xlane.f32.xlu0 %v3470_v6  ;;  %v3496_v9 = vsel %vm3462_vm1, %v4269_v7, 0.0 }
 0x457   :  { %v4271_v8 = vpop.eup %4270 }
 0x458   :  { %v3483_v10 = vsel %vm3462_vm1, %v4271_v8, 0.0  ;;  %v4273_v11 = vpop.eup %4272 }
 0x459   :  { %3497 = vadd.xlane.f32.xlu0 %v3496_v9  ;;  %3484 = vadd.xlane.f32.xlu1 %v3483_v10  ;;  %v3509_v12 = vsel %vm3462_vm1, %v4273_v11, 0.0 }
 0x45d   :  { %3510 = vadd.xlane.f32.xlu1 %v3509_v12 }
 0x4e2   :  { %v3472_v13 = vpop.xlane.xlu0 %3471 }
 0x4e3   :  { %4274 = vrcp.f32 %v3472_v13 }
 0x4e6   :  { %v3485_v20 = vpop.xlane.xlu1 %3484  ;;  %v3498_v21 = vpop.xlane.xlu0 %3497 }
 0x4e7   :  { %4276 = vrcp.f32 %v3485_v20 }
 0x4e8   :  { %4278 = vrcp.f32 %v3498_v21 }
 0x4ea   :  { %v3511_v22 = vpop.xlane.xlu1 %3510 }
 0x4eb   :  { %4280 = vrcp.f32 %v3511_v22 }
 0x4ed   :  { %v4275_v23 = vpop.eup %4274 }
 0x4ee   :  { %v3474_v24 = vmul.f32 %v4275_v23, %v3470_v6 }
 0x4f0   :  { %3475 = vst [vmem:[#allocation11] sm:$0xff] %v3474_v24 }
 0x4f1   :  { %v4277_v62 = vpop.eup %4276 }
 0x4f2   :  { %v4279_v63 = vpop.eup %4278  ;;  %v3487_v25 = vmul.f32 %v4277_v62, %v3483_v10 }
 0x4f3   :  { %v3500_v27 = vmul.f32 %v4279_v63, %v3496_v9 }
 0x4f4   :  { %3488 = vst [vmem:[#allocation11 + $0x8] sm:$0xff] %v3487_v25 }
 0x4f5   :  { %v4281_v29 = vpop.eup %4280  ;;  %3501 = vst [vmem:[#allocation11 + $0x10] sm:$0xff] %v3500_v27 }
 0x4f6   :  { %v3513_v16 = vmul.f32 %v4281_v29, %v3509_v12 }
 0x4f8   :  { %3514 = vst [vmem:[#allocation11 + $0x18] sm:$0xff] %v3513_v16 }
 0x4f9   :  { %4403 = shalt.err (!%p4400_p2)
}
 0x4fa   :  { %s4404_s26 = scalar_lea.hbm %s4671_s9, 512 }
 0x4fb   :  { %p4405_p3 = scmp.ne.s32.totalorder %s4671_s9, %s4404_s26  ;;  %p4408_p4 = scmp.lt.u32.totalorder %s4404_s26, %s4671_s9 }
 0x4fd   :  { %p4410_p5 = pnand %p4408_p4, %p4405_p3 }
 0x4ff   :  { %4413 = shalt.err (!%p4410_p5)
}
 0x500   :  { %3524 = dma.vmem_to_hbm [thread:$0]  %s3522_s12, 512, %s4671_s9, [#allocation4]  }
 0x501   :  { %4420 = dma.done.wait [#allocation4], 512  }
 0x502   :  { %4421 = vsyncadd [#allocation4], 4294966784 }
 0x503   :  { %3528 = vsyncpa [#allocation3], 1 }
 0x504   :  { %3529 = vsyncpa [#allocation6], 1 }
 0x505   :  { %3530 = vsyncpa [#allocation9], 1 }
 0x506   :  { %3531 = vsyncpa [#allocation4], 1 }

</bundles_post_ra>
